<compile_context>
chip_gen: v6e
topology: v6e:2x2x1
jax: 0.10.0
libtpu: 0.0.40
codegen_flags: <defaults>
</compile_context>

<pallas_src>
import jax
import jax.numpy as jnp
from jax.experimental import pallas as pl
from jax.experimental.pallas import tpu as pltpu


def mlp_kernel(x_ref, w1_ref, b1_ref, w2_ref, b2_ref, o_ref, acc_ref):
    # x_ref : (tm, Dp)   compute dtype (bf16/f32)   resident across k
    # w1_ref: (Dp, tk)   compute dtype              hidden tile k
    # b1_ref: (1,  tk)   f32                        hidden tile k
    # w2_ref: (tk, Dp)   compute dtype              hidden tile k
    # b2_ref: (1,  Dp)   f32                        grid-constant
    # o_ref : (tm, Dp)   out dtype                  resident across k
    # acc_ref: (tm, Dp)  f32 VMEM scratch accumulator
    k = pl.program_id(1)

    @pl.when(k == 0)
    def _init():
        acc_ref[...] = jnp.zeros_like(acc_ref)

    # First matmul + bias + ReLU for this hidden tile (f32 on the VPU).
    h = jnp.dot(x_ref[...], w1_ref[...], preferred_element_type=jnp.float32)
    h = jnp.maximum(h + b1_ref[...], 0.0)

    # Second matmul: accumulate this hidden tile's contribution in f32.
    acc_ref[...] += jnp.dot(h.astype(w2_ref.dtype), w2_ref[...],
                            preferred_element_type=jnp.float32)

    @pl.when(k == pl.num_programs(1) - 1)
    def _finalize():
        # TODO(synk): dropout p=0.0 is identity; nonzero-p training dropout
        # would need pltpu.prng_seed / prng_random_bits here.
        o_ref[...] = (acc_ref[...] + b2_ref[...]).astype(o_ref.dtype)


def mlp_pallas(x, w1_t, b1, w2_t, b2, *, tm, tk, out_dtype):
    """x: [Mp, Dp]; w1_t: [Dp, Hp]; b1: [1, Hp]; w2_t: [Hp, Dp]; b2: [1, Dp]."""
    Mp, Dp = x.shape
    Hp = w1_t.shape[1]
    assert Mp % tm == 0 and Hp % tk == 0 and Dp % 128 == 0

    grid = (Mp // tm, Hp // tk)
    return pl.pallas_call(
        mlp_kernel,
        out_shape=jax.ShapeDtypeStruct((Mp, Dp), out_dtype),
        grid_spec=pltpu.PrefetchScalarGridSpec(
            num_scalar_prefetch=0,
            grid=grid,
            in_specs=[
                pl.BlockSpec((tm, Dp), lambda i, k: (i, 0)),   # x (resident over k)
                pl.BlockSpec((Dp, tk), lambda i, k: (0, k)),   # W1 hidden panel
                pl.BlockSpec((1, tk), lambda i, k: (0, k)),    # b1 hidden panel
                pl.BlockSpec((tk, Dp), lambda i, k: (k, 0)),   # W2 hidden panel
                pl.BlockSpec((1, Dp), lambda i, k: (0, 0)),    # b2 (constant)
            ],
            out_specs=pl.BlockSpec((tm, Dp), lambda i, k: (i, 0)),
            scratch_shapes=[pltpu.VMEM((tm, Dp), jnp.float32)],
        ),
        compiler_params=pltpu.CompilerParams(
            dimension_semantics=("parallel", "arbitrary"),
            # Explicit budget: well under v7x's 64 MiB physical VMEM, above the
            # 16/32 MiB default scoped limits on v5e/v6e for large tiles.
            vmem_limit_bytes=48 * 1024 * 1024,
        ),
    )(x, w1_t, b1, w2_t, b2)


def _round_up(a, b):
    return ((a + b - 1) // b) * b


def _pad2d(a, rows, cols, dtype):
    a = a.astype(dtype)
    pr, pc = rows - a.shape[0], cols - a.shape[1]
    if pr or pc:
        a = jnp.pad(a, ((0, pr), (0, pc)))
    return a


def mlp_forward(x_btd, w1, b1, w2, b2, *,
                compute_dtype=jnp.bfloat16, tm=256, tk=512):
    """PyTorch-convention params: w1 [hidden, d_model], b1 [hidden],
    w2 [d_model, hidden], b2 [d_model]. Returns [B, T, d_model] in x's dtype."""
    B, T, D = x_btd.shape
    H = w1.shape[0]
    M = B * T
    out_dtype = x_btd.dtype
    x2d = x_btd.reshape(M, D)

    # Sublane multiple for the compute dtype (f32: 8, bf16: 16).
    sub = 32 // jnp.dtype(compute_dtype).itemsize
    tm_eff = max(sub, min(tm, _round_up(M, sub)))
    Mp = _round_up(M, tm_eff)
    Dp = _round_up(D, 128)                     # lane-dense output (>=128 lanes)
    tk_eff = max(128, min(tk, _round_up(H, 128)))
    Hp = _round_up(H, tk_eff)

    # Zero padding is inert: padded x rows / feature cols contribute nothing
    # to the kept outputs and padded outputs are sliced away below.
    xp = _pad2d(x2d, Mp, Dp, compute_dtype)
    w1p = _pad2d(w1.T, Dp, Hp, compute_dtype)              # [Dp, Hp]
    b1p = _pad2d(b1.reshape(1, -1), 1, Hp, jnp.float32)    # [1, Hp]
    w2p = _pad2d(w2.T, Hp, Dp, compute_dtype)              # [Hp, Dp]
    b2p = _pad2d(b2.reshape(1, -1), 1, Dp, jnp.float32)    # [1, Dp]

    out = mlp_pallas(xp, w1p, b1p, w2p, b2p,
                     tm=tm_eff, tk=tk_eff, out_dtype=out_dtype)
    return out[:M, :D].reshape(B, T, D)


if __name__ == "__main__":
    # Small-but-tileable shapes: exercises M padding (320 -> 512) and two
    # hidden-reduction grid steps (1024 / 512).
    B, T, d_model, hidden = 2, 160, 256, 1024

    key = jax.random.PRNGKey(0)
    kx, kw1, kb1, kw2, kb2 = jax.random.split(key, 5)

    x = jax.random.normal(kx, (B, T, d_model), dtype=jnp.float32)
    # nn.Linear(d_model, hidden): weight [hidden, d_model], bias [hidden]
    w1 = jax.random.normal(kw1, (hidden, d_model), dtype=jnp.float32) * 0.05
    b1 = jax.random.normal(kb1, (hidden,), dtype=jnp.float32) * 0.05
    # nn.Linear(hidden, d_model): weight [d_model, hidden], bias [d_model]
    w2 = jax.random.normal(kw2, (d_model, hidden), dtype=jnp.float32) * 0.05
    b2 = jax.random.normal(kb2, (d_model,), dtype=jnp.float32) * 0.05

    out = mlp_forward(x, w1, b1, w2, b2)
    out = jax.block_until_ready(out)
    assert out.shape == (B, T, d_model)

    # Mixed-precision JAX reference (same dtype strategy as the kernel).
    cd = jnp.bfloat16
    x2d = x.reshape(-1, d_model)
    h_m = jnp.dot(x2d.astype(cd), w1.T.astype(cd),
                  preferred_element_type=jnp.float32) + b1
    h_m = jnp.maximum(h_m, 0.0)
    ref_m = (jnp.dot(h_m.astype(cd), w2.T.astype(cd),
                     preferred_element_type=jnp.float32) + b2
             ).reshape(B, T, d_model)
    assert jnp.allclose(out, ref_m, atol=1e-2, rtol=1e-2)

    # Full-f32 PyTorch-semantics reference (dropout p=0.0 -> identity);
    # loose tolerance accounts for bf16 matmul operands.
    ref_f32 = jnp.maximum(x @ w1.T + b1, 0.0) @ w2.T + b2
    assert jnp.allclose(out, ref_f32, atol=1e-1, rtol=1e-1)

    print("KERNEL_OK")
</pallas_src>

<mosaic_0001>
module attributes {stable_mosaic.version = 11 : i64} {
  func.func @mlp_kernel(%arg0: i32, %arg1: i32, %arg2: memref<256x256xbf16, #tpu.memory_space<vmem>>, %arg3: memref<256x512xbf16, #tpu.memory_space<vmem>>, %arg4: memref<1x512xf32, #tpu.memory_space<vmem>>, %arg5: memref<512x256xbf16, #tpu.memory_space<vmem>>, %arg6: memref<1x256xf32, #tpu.memory_space<vmem>>, %arg7: memref<256x256xf32, #tpu.memory_space<vmem>>, %arg8: memref<256x256xf32, #tpu.memory_space<vmem>>) attributes {dimension_semantics = [#tpu.dimension_semantics<parallel>, #tpu.dimension_semantics<arbitrary>], iteration_bounds = array<i64: 2, 2>, scalar_prefetch = 0 : i64, scratch_operands = 1 : i64, tpu.core_type = #tpu.core_type<tc>, window_params = [{transform_indices = @transform_0, window_bounds = array<i64: 256, 256>}, {transform_indices = @transform_1, window_bounds = array<i64: 256, 512>}, {transform_indices = @transform_2, window_bounds = array<i64: 1, 512>}, {transform_indices = @transform_3, window_bounds = array<i64: 512, 256>}, {pipeline_mode = #tpu.pipeline_mode<synchronous>, transform_indices = @transform_4, window_bounds = array<i64: 1, 256>}, {transform_indices = @transform_5, window_bounds = array<i64: 256, 256>}]} {
    %c0_i32 = arith.constant 0 : i32
    %0 = arith.cmpi eq, %arg1, %c0_i32 : i32
    %1 = arith.extui %0 : i1 to i32
    %c0_i32_0 = arith.constant 0 : i32
    %2 = arith.cmpi ne, %1, %c0_i32_0 : i32
    scf.if %2 {
      %cst_15 = arith.constant 0.000000e+00 : f32
      %20 = vector.broadcast %cst_15 : f32 to vector<256x256xf32>
      %c0_16 = arith.constant 0 : index
      %c0_17 = arith.constant 0 : index
      %21 = vector.load %arg8[%c0_16, %c0_17] : memref<256x256xf32, #tpu.memory_space<vmem>>, vector<256x256xf32>
      tpu.vector_store %arg8[%c0_16, %c0_17], %20 {strides = array<i32>} : memref<256x256xf32, #tpu.memory_space<vmem>>, vector<256x256xf32>,
    } else {
    }
    %c0 = arith.constant 0 : index
    %c0_1 = arith.constant 0 : index
    %3 = vector.load %arg2[%c0, %c0_1] : memref<256x256xbf16, #tpu.memory_space<vmem>>, vector<256x256xbf16>
    %c0_2 = arith.constant 0 : index
    %c0_3 = arith.constant 0 : index
    %4 = vector.load %arg3[%c0_2, %c0_3] : memref<256x512xbf16, #tpu.memory_space<vmem>>, vector<256x512xbf16>
    %cst = arith.constant dense<0.000000e+00> : vector<256x512xf32>
    %5 = tpu.matmul %3, %4, %cst {dimension_numbers = #tpu.dot_dimension_numbers<[1], [0], [0], [1], [0, 0, 1, 1], [], []>} : vector<256x256xbf16>, vector<256x512xbf16>, vector<256x512xf32> -> vector<256x512xf32>
    %c0_4 = arith.constant 0 : index
    %c0_5 = arith.constant 0 : index
    %6 = vector.load %arg4[%c0_4, %c0_5] : memref<1x512xf32, #tpu.memory_space<vmem>>, vector<1x512xf32>
    %7 = vector.broadcast %6 : vector<1x512xf32> to vector<256x512xf32>
    %8 = arith.addf %5, %7 : vector<256x512xf32>
    %cst_6 = arith.constant 0.000000e+00 : f32
    %9 = vector.broadcast %cst_6 : f32 to vector<256x512xf32>
    %10 = arith.maximumf %8, %9 : vector<256x512xf32>
    %c0_7 = arith.constant 0 : index
    %c0_8 = arith.constant 0 : index
    %11 = vector.load %arg8[%c0_7, %c0_8] : memref<256x256xf32, #tpu.memory_space<vmem>>, vector<256x256xf32>
    %12 = arith.truncf %10 : vector<256x512xf32> to vector<256x512xbf16>
    %c0_9 = arith.constant 0 : index
    %c0_10 = arith.constant 0 : index
    %13 = vector.load %arg5[%c0_9, %c0_10] : memref<512x256xbf16, #tpu.memory_space<vmem>>, vector<512x256xbf16>
    %cst_11 = arith.constant dense<0.000000e+00> : vector<256x256xf32>
    %14 = tpu.matmul %12, %13, %cst_11 {dimension_numbers = #tpu.dot_dimension_numbers<[1], [0], [0], [1], [0, 0, 1, 1], [], []>} : vector<256x512xbf16>, vector<512x256xbf16>, vector<256x256xf32> -> vector<256x256xf32>
    %15 = arith.addf %11, %14 : vector<256x256xf32>
    %c0_12 = arith.constant 0 : index
    %c0_13 = arith.constant 0 : index
    %16 = vector.load %arg8[%c0_12, %c0_13] : memref<256x256xf32, #tpu.memory_space<vmem>>, vector<256x256xf32>
    tpu.vector_store %arg8[%c0_12, %c0_13], %15 {strides = array<i32>} : memref<256x256xf32, #tpu.memory_space<vmem>>, vector<256x256xf32>,
    %c1_i32 = arith.constant 1 : i32
    %17 = arith.cmpi eq, %arg1, %c1_i32 : i32
    %18 = arith.extui %17 : i1 to i32
    %c0_i32_14 = arith.constant 0 : i32
    %19 = arith.cmpi ne, %18, %c0_i32_14 : i32
    scf.if %19 {
      %c0_15 = arith.constant 0 : index
      %c0_16 = arith.constant 0 : index
      %20 = vector.load %arg8[%c0_15, %c0_16] : memref<256x256xf32, #tpu.memory_space<vmem>>, vector<256x256xf32>
      %c0_17 = arith.constant 0 : index
      %c0_18 = arith.constant 0 : index
      %21 = vector.load %arg6[%c0_17, %c0_18] : memref<1x256xf32, #tpu.memory_space<vmem>>, vector<1x256xf32>
      %22 = vector.broadcast %21 : vector<1x256xf32> to vector<256x256xf32>
      %23 = arith.addf %20, %22 : vector<256x256xf32>
      %c0_19 = arith.constant 0 : index
      %c0_20 = arith.constant 0 : index
      %24 = vector.load %arg7[%c0_19, %c0_20] : memref<256x256xf32, #tpu.memory_space<vmem>>, vector<256x256xf32>
      tpu.vector_store %arg7[%c0_19, %c0_20], %23 {strides = array<i32>} : memref<256x256xf32, #tpu.memory_space<vmem>>, vector<256x256xf32>,
    } else {
    }
    return
  }
  func.func @transform_0(%arg0: i32, %arg1: i32) -> (i32, i32) {
    %c0_i32 = arith.constant 0 : i32
    %c0_i32_0 = arith.constant 0 : i32
    return %arg0, %c0_i32 : i32, i32
  }
  func.func @transform_1(%arg0: i32, %arg1: i32) -> (i32, i32) {
    %c0_i32 = arith.constant 0 : i32
    %c0_i32_0 = arith.constant 0 : i32
    return %c0_i32, %arg1 : i32, i32
  }
  func.func @transform_2(%arg0: i32, %arg1: i32) -> (i32, i32) {
    %c0_i32 = arith.constant 0 : i32
    %c0_i32_0 = arith.constant 0 : i32
    return %c0_i32, %arg1 : i32, i32
  }
  func.func @transform_3(%arg0: i32, %arg1: i32) -> (i32, i32) {
    %c0_i32 = arith.constant 0 : i32
    %c0_i32_0 = arith.constant 0 : i32
    return %arg1, %c0_i32 : i32, i32
  }
  func.func @transform_4(%arg0: i32, %arg1: i32) -> (i32, i32) {
    %c0_i32 = arith.constant 0 : i32
    %c0_i32_0 = arith.constant 0 : i32
    %c0_i32_1 = arith.constant 0 : i32
    return %c0_i32, %c0_i32_0 : i32, i32
  }
  func.func @transform_5(%arg0: i32, %arg1: i32) -> (i32, i32) {
    %c0_i32 = arith.constant 0 : i32
    %c0_i32_0 = arith.constant 0 : i32
    return %arg0, %c0_i32 : i32, i32
  }
}

</mosaic_0001>

<bundles_post_ra>
// kernel: tpu_custom_call.1
= control target key start
LH: loop header
LB: loop body
LE: loop exit
PB: predicated region body
PF: predicated region fallthrough
CT: control target
= control target key end

     0   :  { %s4631_s0 = inlined_call_operand.hbm [shape: bf16[512,256], index: 0, kind: input, shape index: {}]   ;;  %s4632_s1 = inlined_call_operand.hbm [shape: bf16[256,1024], index: 1, kind: input, shape index: {}]   ;;  %s4633_s2 = inlined_call_operand.hbm [shape: f32[1,1024], index: 2, kind: input, shape index: {}]   ;;  %s4634_s3 = inlined_call_operand.hbm [shape: bf16[1024,256], index: 3, kind: input, shape index: {}]   ;;  %s4635_s4 = inlined_call_operand.vmem [shape: f32[1,256], index: 4, kind: input, shape index: {}]   ;;  %s4636_s5 = inlined_call_operand.hbm [shape: f32[512,256], index: 5, kind: output, shape index: {}]  }
   0x1   :  { %4649 = sst [smem:[#allocation26_spill]] %s4631_s0 }
   0x2   :  { %4650 = sst [smem:[#allocation27_spill]] %s4632_s1 }
   0x3   :  { %4651 = sst [smem:[#allocation28_spill]] %s4635_s4 }
   0x4   :  { %4652 = sst [smem:[#allocation29_spill]] %s4636_s5 }
   0x5   :  { %10 = vsyncpa [#allocation4], 0 }
   0x6   :  { %12 = vsyncpa [#allocation4 + $0x1], 0 }
   0x7   :  { %13 = vsyncpa [#allocation7], 0 }
   0x8   :  { %15 = vsyncpa [#allocation7 + $0x1], 0 }
   0x9   :  { %16 = vsyncpa [#allocation10], 0 }
   0xa   :  { %18 = vsyncpa [#allocation10 + $0x1], 0 }
   0xb   :  { %19 = vsyncpa [#allocation5], 0 }
   0xc   :  { %21 = vsyncpa [#allocation5 + $0x1], 0  ;;  %s3806_s18 = smov 0   ;;  %s3808_s19 = smov 0  }
   0xd   :  { %s3810_s20 = smov 0   ;;  %s3812_s21 = smov 0  }
   0xe   :  { %s3814_s22 = smov 0   ;;  %s3816_s23 = smov 0  }
   0xf   :  { %s3818_s24 = smov 0   ;;  %s3820_s25 = smov 0  }
  0x10   :  { %s3822_s26 = smov 0   ;;  %s3824_s27 = smov 0  }
  0x11   :  { %s3826_s28 = smov 0  }
  0x12 LB: > { %4653 = sst [smem:[#allocation16_spill]] %s3729_s20  ;;  %p54_p0 = scmp.eq.s32.totalorder %s3761_s28, 0  ;;  %s3761_s28 = sphi %s3826_s28, %s27_s28   ;;  %s3757_s27 = sphi %s3824_s27, %s4690_s27   ;;  %s3753_s26 = sphi %s3822_s26, %s4697_s26   ;;  %s3749_s25 = sphi %s3820_s25, %s4696_s25   ;;  %s3745_s24 = sphi %s3818_s24, %s4695_s24   ;;  %s3741_s23 = sphi %s3816_s23, %s4687_s23   ;;  %s3737_s22 = sphi %s3814_s22, %s4694_s22   ;;  %s3733_s21 = sphi %s3812_s21, %s4693_s21   ;;  %s3729_s20 = sphi %s3810_s20, %s4685_s20   ;;  %s3725_s19 = sphi %s3808_s19, %s4692_s19   ;;  %s3721_s18 = sphi %s3806_s18, %s4691_s18  }
  0x13   : > { %4654 = sst [smem:[#allocation17_spill]] %s3733_s21  ;;  %s72_s29 = sadd.s32 1, %s3729_s20 }
  0x14   : > { %4655 = sst [smem:[#allocation18_spill]] %s3741_s23  ;;  %p79_p1 = scmp.ne.s32.totalorder %s3729_s20, %s3725_s19 }
  0x15   : > { %4656 = sst [smem:[#allocation19_spill]] %s3749_s25  ;;  %p85_p2 = scmp.ne.s32.totalorder %s3725_s19, %s3721_s18 }
  0x16   : > { %4657 = sst [smem:[#allocation20_spill]] %s3757_s27  ;;  %p4640_p3 = scmp.lt.s32.totalorder %s3761_s28, 4 }
  0x17   : > { %p81_p4 = por %p79_p1, %p54_p0  ;;  %s233_s30 = sand.u32 1, %s3761_s28  }
  0x18   : > { %s3872_s6 = sand.u32 1, %s3729_s20   ;;  %s3150_s8 = sshll.u32 %s3753_s26, 8 }
  0x19   : > { %s4637_s7 = sshll.u32 %s3872_s6, 9  ;;  %s4658_s1 = sld [smem:[#allocation27_spill]] }
  0x1a   : > { %s237_s12 = scalar_lea.vmem [#allocation6], %s4637_s7  ;;  %p3883_p5 = pnand %p4640_p3, %p81_p4 }
  0x1b   : > { %s244_s13 = sshll.u32 %s237_s12, 4  ;;  %p2974_p6 = scmp.ge.s32.totalorder %s3761_s28, 1  ;;  %s245_s13 = int_to_ptr.vmem [resolvable:$true] %s244_s13 }
  0x1c   : > { %s3888_s15 = scalar_lea.sflag [#allocation7], %s233_s30  ;;  %p4639_p7 = pneg %p3883_p5 }
  0x1d   : > { %s3534_s16 = scalar_lea.vmem %s245_s13, 8192  ;;  %s3763_s17 = smov [#allocation6]  }
  0x1e   : > { %p3535_p8 = scmp.ne.s32.totalorder %s245_s13, %s3534_s16 }
  0x1f   : > { %s243_s11 = scalar_lea.hbm %s4658_s1, %s3150_s8  ;;  %s3539_s8 = sshll.u32 %s3763_s17, 4  ;;  %s3540_s8 = int_to_ptr.vmem [resolvable:$false] %s3539_s8 }
  0x20   : > { %p3537_p9 = pnand %p3535_p8, %p4639_p7  ;;  %s3541_s9 = scalar_lea.vmem %s3540_s8, 16384 }
  0x21   : > { %p3542_p11 = scmp.lt.s32.totalorder %s245_s13, %s3540_s8  ;;  %p3543_p12 = scmp.lt.s32.totalorder %s3541_s9, %s3534_s16 }
  0x22   : > { %p3538_p10 = pneg %p3537_p9 }
  0x23   : > { %p3544_p13 = por %p3543_p12, %p3542_p11 }
  0x25   : > { %p3545_p1 = pnand %p3544_p13, %p3538_p10 }
  0x27   : > { %3548 = shalt.err (!%p3545_p1)
}
  0x28   : > { %s3764_s10 = smov 512   ;;  %s3765_s30 = smov 256  }
  0x29   : > { %s3766_s12 = smov 16   ;;  %p293_p4 = scmp.lt.s32.totalorder %s3761_s28, 5 }
  0x2a   : > { %3172 = dma.hbm_to_vmem [thread:$0]  (!%p3883_p5), %s243_s11, 8192, %s245_s13, %s3888_s15, %s3764_s10, %s3765_s30, %s3766_s12  }
  0x2b   : > { %p3901_p8 = pnand %p2974_p6, %p293_p4  ;;  %s3906_s17 = sadd.s32 4294967295, %s3761_s28  }
  0x2c   : > { %s2957_s8 = sadd.s32 4294967294, %s3761_s28   ;;  %s36_s9 = sadd.s32 1, %s3753_s26 }
  0x2d   : > { %s39_s7 = sadd.s32 1, %s3757_s27  ;;  %p37_p9 = scmp.ge.s32.totalorder %s36_s9, 2 }
  0x2e   : > { %s46_s11 = sadd.s32 1, %s3741_s23  ;;  %p53_p10 = scmp.ne.s32.totalorder %s3741_s23, %s3737_s22 }
  0x2f   : > { %p59_p11 = scmp.ne.s32.totalorder %s3737_s22, %s3733_s21  ;;  %s4699_s9 = smov (%p37_p9, %s36_s9), 0 }
  0x30   : > { %4661 = sst [smem:[#allocation21_spill]] %s4699_s9  ;;  %s4701_s7 = smov (!%p37_p9, %s39_s7), %s3757_s27 }
  0x31   : > { %p3924_p6 = por %p54_p0, %p53_p10  ;;  %p60_p12 = scmp.eq.s32.totalorder %s3906_s17, 0 }
  0x32   : > { %p41_p13 = scmp.ge.s32.totalorder %s4701_s7, 2  ;;  %s69_s10 = ssub.s32 %s3753_s26, %s4699_s9 }
  0x33   : > { %p3934_p1 = por %p60_p12, %p59_p11  ;;  %p70_p4 = scmp.eq.s32.totalorder %s69_s10, 0 }
  0x34   : > { %s4703_s7 = smov (%p41_p13, %s4701_s7), 0  ;;  %p3950_p0 = por %p85_p2, %p60_p12 }
  0x35   : > { %4664 = sst [smem:[#allocation22_spill]] %s4703_s7  ;;  %s43_s1 = ssub.s32 %s3757_s27, %s4703_s7 }
  0x36   : > { %s3943_s12 = scalar_select %p70_p4, %s3729_s20, %s72_s29  }
  0x37   : > { %p44_p9 = scmp.eq.s32.totalorder %s43_s1, 0  ;;  %p182_p7 = scmp.eq.s32.totalorder %s3906_s17, 3 }
  0x38   : > { %4665 = sst [smem:[#allocation23_spill]] %s3943_s12  ;;  %p188_p3 = scmp.eq.s32.totalorder %s2957_s8, 3 }
  0x39   : > { %s211_s9 = sand.u32 1, %s3741_s23   ;;  %p3962_p13 = por %p182_p7, %p53_p10 }
  0x3a   : > { %s3957_s10 = scalar_select %p44_p9, %s3741_s23, %s46_s11  }
  0x3b   : > { %s4668_s25 = scalar_select %p3962_p13, 1, 0 }
  0x3c   : > { %4667 = sst [smem:[#allocation24_spill]] %s3957_s10  ;;  %p3969_p4 = por %p188_p3, %p59_p11 }
  0x3d   : > { %s2960_s18 = sshll.u32 %s211_s9, 8  ;;  %s3149_s7 = sshll.u32 %s3757_s27, 12 }
  0x3e   : > { %s4669_s29 = scalar_select %p3969_p4, 1, 0 }
  0x3f   : > { %s4671_s0 = sld [smem:[#allocation26_spill]]  ;;  %s215_s8 = scalar_lea.vmem [#allocation3], %s2960_s18 }
  0x40   : > { %4670 = sst [smem:[#allocation25_spill]] %s4669_s29  ;;  %s223_s4 = sshll.u32 %s215_s8, 4  ;;  %s224_s4 = int_to_ptr.vmem [resolvable:$true] %s223_s4 }
  0x41   : > { %p4672_p2 = scmp.lt.s32.totalorder %s3761_s28, 4  ;;  %s2967_s10 = sshll.u32 %s3872_s6, 2 }
  0x42   : > { %s212_s23 = scalar_lea.sflag [#allocation4], %s211_s9  ;;  %s3562_s29 = scalar_lea.vmem %s224_s4, 4096 }
  0x43   : > { %p3981_p7 = pnand %p4672_p2, %p3924_p6  ;;  %p3563_p10 = scmp.ne.s32.totalorder %s224_s4, %s3562_s29 }
  0x44   : > { %s3767_s20 = smov [#allocation3]  }
  0x45   : > { %s222_s1 = scalar_lea.hbm %s4671_s0, %s3149_s7  ;;  %p3551_p3 = pneg %p3981_p7 }
  0x46   : > { %s3567_s7 = sshll.u32 %s3767_s20, 4  ;;  %s3568_s7 = int_to_ptr.vmem [resolvable:$false] %s3567_s7 }
  0x47   : > { %p3565_p11 = pnand %p3563_p10, %p3551_p3  ;;  %s3569_s12 = scalar_lea.vmem %s3568_s7, 8192 }
  0x48   : > { %p3570_p9 = scmp.lt.s32.totalorder %s224_s4, %s3568_s7  ;;  %p3571_p4 = scmp.lt.s32.totalorder %s3569_s12, %s3562_s29 }
  0x49   : > { %p3566_p12 = pneg %p3565_p11 }
  0x4a   : > { %p3572_p13 = por %p3571_p4, %p3570_p9 }
  0x4c   : > { %p3573_p6 = pnand %p3572_p13, %p3566_p12 }
  0x4e   : > { %3576 = shalt.err (!%p3573_p6)
}
  0x4f   : > { %s3768_s13 = smov 128   ;;  %s3769_s9 = smov 8  }
  0x50   : > { %3169 = dma.hbm_to_vmem [thread:$0]  (!%p3981_p7), %s222_s1, 4096, %s224_s4, %s212_s23, %s3768_s13, %s3768_s13, %s3769_s9  }
  0x51   : > { %s3151_s18 = sshll.u32 %s3753_s26, 6  ;;  %s258_s7 = scalar_lea.vmem [#allocation8], %s2967_s10 }
  0x52   : > { %s264_s0 = scalar_lea.hbm %s4633_s2, %s3151_s18  ;;  %s266_s29 = sshll.u32 %s258_s7, 4  ;;  %s267_s29 = int_to_ptr.vmem [resolvable:$true] %s266_s29 }
  0x53   : > { %s3590_s12 = scalar_lea.vmem %s267_s29, 64  ;;  %p4674_p4 = pneg %p3883_p5 }
  0x54   : > { %p3591_p13 = scmp.ne.s32.totalorder %s267_s29, %s3590_s12  ;;  %s3770_s27 = smov [#allocation8]  }
  0x55   : > { %s3595_s11 = sshll.u32 %s3770_s27, 4  ;;  %s3596_s11 = int_to_ptr.vmem [resolvable:$false] %s3595_s11 }
  0x56   : > { %p3593_p2 = pnand %p3591_p13, %p4674_p4  ;;  %s3597_s21 = scalar_lea.vmem %s3596_s11, 128 }
  0x57   : > { %p3598_p10 = scmp.lt.s32.totalorder %s267_s29, %s3596_s11  ;;  %p3599_p7 = scmp.lt.s32.totalorder %s3597_s21, %s3590_s12 }
  0x58   : > { %p3594_p3 = pneg %p3593_p2 }
  0x59   : > { %p3600_p11 = por %p3599_p7, %p3598_p10 }
  0x5b   : > { %p3601_p12 = pnand %p3600_p11, %p3594_p3 }
  0x5d   : > { %3604 = shalt.err (!%p3601_p12)
}
  0x5e   : > { %3175 = dma.hbm_to_vmem [thread:$0]  (!%p3883_p5), %s264_s0, 64, %s267_s29, %s3888_s15  }
  0x5f   : > { %s3153_s4 = sshll.u32 %s3753_s26, 13  ;;  %s4675_s1 = sshll.u32 %s3872_s6, 9 }
  0x60   : > { %s284_s27 = scalar_lea.hbm %s4634_s3, %s3153_s4  ;;  %s277_s18 = scalar_lea.vmem [#allocation9], %s4675_s1 }
  0x61   : > { %s285_s8 = sshll.u32 %s277_s18, 4  ;;  %s274_s21 = scalar_lea.sflag [#allocation10], %s3872_s6  ;;  %s286_s8 = int_to_ptr.vmem [resolvable:$true] %s285_s8 }
  0x62   : > { %s3618_s20 = scalar_lea.vmem %s286_s8, 8192  ;;  %p4676_p6 = pmov %p4674_p4 }
  0x63   : > { %p3619_p9 = scmp.ne.s32.totalorder %s286_s8, %s3618_s20  ;;  %s3771_s7 = smov [#allocation9]  }
  0x64   : > { %s3623_s12 = sshll.u32 %s3771_s7, 4  ;;  %s3624_s12 = int_to_ptr.vmem [resolvable:$false] %s3623_s12 }
  0x65   : > { %p3621_p13 = pnand %p3619_p9, %p4676_p6  ;;  %s3625_s0 = scalar_lea.vmem %s3624_s12, 16384 }
  0x66   : > { %p3626_p2 = scmp.lt.s32.totalorder %s286_s8, %s3624_s12  ;;  %p3627_p3 = scmp.lt.s32.totalorder %s3625_s0, %s3618_s20 }
  0x67   : > { %p3622_p4 = pneg %p3621_p13 }
  0x68   : > { %p3628_p10 = por %p3627_p3, %p3626_p2 }
  0x6a   : > { %p3629_p7 = pnand %p3628_p10, %p3622_p4 }
  0x6c   : > { %3632 = shalt.err (!%p3629_p7)
}
  0x6d   : > { %3178 = dma.hbm_to_vmem [thread:$0]  (!%p3883_p5), %s284_s27, 8192, %s286_s8, %s274_s21, %s3768_s13, %s3768_s13, %s3769_s9  }
  0x6e   : > { %297 = sbr.rel (%p3901_p8) target bundleno = 822 (0x336), region = 40  ;;  %s4021_s6 = sand.u32 (!%p3901_p8), 1, %s3737_s22  }
  0x6f   : > { %s2975_s15 = sshll.u32 (!%p3901_p8), %s4021_s6, 8  ;;  %s300_s29 = scalar_lea.sflag (!%p3901_p8), [#allocation4], %s4021_s6 }
  0x70   : > { %s4025_s11 = scalar_lea.vmem (!%p3901_p8), [#allocation3], %s2975_s15 }
  0x73   : > { %3704 = dma.done.wait (%p3934_p1), %s300_s29, 4096  }
  0x74   : > { %3706 = vsyncadd (%p3934_p1), %s300_s29, 4294963200  ;;  %s308_s14 = sand.u32 1, %s3906_s17   ;;  %s310_s16 = sand.u32 1, %s3725_s19  }
  0x75   : > { %s2976_s13 = sshll.u32 %s310_s16, 9  ;;  %s309_s9 = scalar_lea.sflag [#allocation7], %s308_s14 }
  0x76   : > { %s4033_s4 = scalar_lea.vmem [#allocation6], %s2976_s13 }
  0x77   : > { %3708 = dma.done.wait (%p3950_p0), %s309_s9, 8256  }
  0x78   : > { %3710 = vsyncadd (%p3950_p0), %s309_s9, 4294959040  ;;  %s2977_s23 = sshll.u32 %s310_s16, 2  ;;  %s327_s30 = scalar_lea.sflag [#allocation10], %s310_s16 }
  0x79   : > { %s4039_s10 = scalar_lea.vmem [#allocation8], %s2977_s23  ;;  %s4041_s27 = scalar_lea.vmem [#allocation9], %s2976_s13 }
  0x7a   : > { %3712 = dma.done.wait (%p3950_p0), %s327_s30, 8192  }
  0x7b   : > { %3714 = vsyncadd (%p3950_p0), %s327_s30, 4294959104  ;;  %s2979_s17 = sshll.u32 %s4021_s6, 9  ;;  %p2980_p5 = scmp.ne.s32.totalorder %s3745_s24, 0 }
  0x7c   : > { %s4048_s1 = scalar_lea.vmem [#allocation11], %s2979_s17 }
  0x7d   : > { %380 = sbr.rel (%p2980_p5) target bundleno = 163 (0xa3), region = 60 }
  0x82   : > { %v3772_v0 = vmov 0.0  }
  0x83   : > { %381 = vst [vmem:[#allocation2 + $0xb0] sm:$0xff] %v3772_v0  ;;  %382 = vst [vmem:[#allocation2 + $0x1b0] sm:$0xff] %v3772_v0 }
  0x84   : > { %383 = vst [vmem:[#allocation2 + $0xd8] sm:$0xff] %v3772_v0  ;;  %384 = vst [vmem:[#allocation2 + $0x18] sm:$0xff] %v3772_v0 }
  0x85   : > { %385 = vst [vmem:[#allocation2 + $0x50] sm:$0xff] %v3772_v0  ;;  %386 = vst [vmem:[#allocation2 + $0x168] sm:$0xff] %v3772_v0 }
  0x86   : > { %387 = vst [vmem:[#allocation2 + $0x130] sm:$0xff] %v3772_v0  ;;  %388 = vst [vmem:[#allocation2 + $0x48] sm:$0xff] %v3772_v0 }
  0x87   : > { %389 = vst [vmem:[#allocation2 + $0x180] sm:$0xff] %v3772_v0  ;;  %390 = vst [vmem:[#allocation2 + $0x110] sm:$0xff] %v3772_v0 }
  0x88   : > { %391 = vst [vmem:[#allocation2 + $0x118] sm:$0xff] %v3772_v0  ;;  %392 = vst [vmem:[#allocation2 + $0x98] sm:$0xff] %v3772_v0 }
  0x89   : > { %393 = vst [vmem:[#allocation2 + $0x120] sm:$0xff] %v3772_v0  ;;  %394 = vst [vmem:[#allocation2 + $0x150] sm:$0xff] %v3772_v0 }
  0x8a   : > { %395 = vst [vmem:[#allocation2 + $0x108] sm:$0xff] %v3772_v0  ;;  %396 = vst [vmem:[#allocation2 + $0x60] sm:$0xff] %v3772_v0 }
  0x8b   : > { %397 = vst [vmem:[#allocation2 + $0xe0] sm:$0xff] %v3772_v0  ;;  %398 = vst [vmem:[#allocation2 + $0x188] sm:$0xff] %v3772_v0 }
  0x8c   : > { %399 = vst [vmem:[#allocation2 + $0x138] sm:$0xff] %v3772_v0  ;;  %400 = vst [vmem:[#allocation2 + $0x140] sm:$0xff] %v3772_v0 }
  0x8d   : > { %401 = vst [vmem:[#allocation2 + $0x80] sm:$0xff] %v3772_v0  ;;  %402 = vst [vmem:[#allocation2 + $0x1a8] sm:$0xff] %v3772_v0 }
  0x8e   : > { %403 = vst [vmem:[#allocation2 + $0x1b8] sm:$0xff] %v3772_v0  ;;  %404 = vst [vmem:[#allocation2 + $0x28] sm:$0xff] %v3772_v0 }
  0x8f   : > { %405 = vst [vmem:[#allocation2 + $0x1e8] sm:$0xff] %v3772_v0  ;;  %406 = vst [vmem:[#allocation2 + $0xf8] sm:$0xff] %v3772_v0 }
  0x90   : > { %407 = vst [vmem:[#allocation2 + $0x160] sm:$0xff] %v3772_v0  ;;  %408 = vst [vmem:[#allocation2 + $0x30] sm:$0xff] %v3772_v0 }
  0x91   : > { %409 = vst [vmem:[#allocation2 + $0x1e0] sm:$0xff] %v3772_v0  ;;  %410 = vst [vmem:[#allocation2] sm:$0xff] %v3772_v0 }
  0x92   : > { %411 = vst [vmem:[#allocation2 + $0xf0] sm:$0xff] %v3772_v0  ;;  %412 = vst [vmem:[#allocation2 + $0x8] sm:$0xff] %v3772_v0 }
  0x93   : > { %413 = vst [vmem:[#allocation2 + $0x148] sm:$0xff] %v3772_v0  ;;  %414 = vst [vmem:[#allocation2 + $0x1d0] sm:$0xff] %v3772_v0 }
  0x94   : > { %415 = vst [vmem:[#allocation2 + $0x100] sm:$0xff] %v3772_v0  ;;  %416 = vst [vmem:[#allocation2 + $0xc8] sm:$0xff] %v3772_v0 }
  0x95   : > { %417 = vst [vmem:[#allocation2 + $0x40] sm:$0xff] %v3772_v0  ;;  %418 = vst [vmem:[#allocation2 + $0x1f8] sm:$0xff] %v3772_v0 }
  0x96   : > { %419 = vst [vmem:[#allocation2 + $0x20] sm:$0xff] %v3772_v0  ;;  %420 = vst [vmem:[#allocation2 + $0x128] sm:$0xff] %v3772_v0 }
  0x97   : > { %421 = vst [vmem:[#allocation2 + $0x1a0] sm:$0xff] %v3772_v0  ;;  %422 = vst [vmem:[#allocation2 + $0x1f0] sm:$0xff] %v3772_v0 }
  0x98   : > { %423 = vst [vmem:[#allocation2 + $0xe8] sm:$0xff] %v3772_v0  ;;  %424 = vst [vmem:[#allocation2 + $0x78] sm:$0xff] %v3772_v0 }
  0x99   : > { %425 = vst [vmem:[#allocation2 + $0x70] sm:$0xff] %v3772_v0  ;;  %426 = vst [vmem:[#allocation2 + $0x90] sm:$0xff] %v3772_v0 }
  0x9a   : > { %427 = vst [vmem:[#allocation2 + $0x1d8] sm:$0xff] %v3772_v0  ;;  %428 = vst [vmem:[#allocation2 + $0xd0] sm:$0xff] %v3772_v0 }
  0x9b   : > { %429 = vst [vmem:[#allocation2 + $0xb8] sm:$0xff] %v3772_v0  ;;  %430 = vst [vmem:[#allocation2 + $0x88] sm:$0xff] %v3772_v0 }
  0x9c   : > { %431 = vst [vmem:[#allocation2 + $0xa8] sm:$0xff] %v3772_v0  ;;  %432 = vst [vmem:[#allocation2 + $0x1c8] sm:$0xff] %v3772_v0 }
  0x9d   : > { %433 = vst [vmem:[#allocation2 + $0x170] sm:$0xff] %v3772_v0  ;;  %434 = vst [vmem:[#allocation2 + $0x178] sm:$0xff] %v3772_v0 }
  0x9e   : > { %435 = vst [vmem:[#allocation2 + $0x68] sm:$0xff] %v3772_v0  ;;  %436 = vst [vmem:[#allocation2 + $0x190] sm:$0xff] %v3772_v0 }
  0x9f   : > { %437 = vst [vmem:[#allocation2 + $0x198] sm:$0xff] %v3772_v0  ;;  %438 = vst [vmem:[#allocation2 + $0x38] sm:$0xff] %v3772_v0 }
  0xa0   : > { %439 = vst [vmem:[#allocation2 + $0xc0] sm:$0xff] %v3772_v0  ;;  %440 = vst [vmem:[#allocation2 + $0x1c0] sm:$0xff] %v3772_v0 }
  0xa1   : > { %441 = vst [vmem:[#allocation2 + $0x158] sm:$0xff] %v3772_v0  ;;  %442 = vst [vmem:[#allocation2 + $0x10] sm:$0xff] %v3772_v0 }
  0xa2   : > { %443 = vst [vmem:[#allocation2 + $0x58] sm:$0xff] %v3772_v0  ;;  %444 = vst [vmem:[#allocation2 + $0xa0] sm:$0xff] %v3772_v0 }
  0xa3 PF: > { %v3281_v1 = vld [vmem:[%s4033_s4 + $0xe4] ss:$16 sps:$4 sm:$0xff]   ;;  %v3283_v2 = vld [vmem:[%s4033_s4 + $0xec] ss:$16 sps:$4 sm:$0xff]   ;;  %v3285_v3 = vld [vmem:[%s4033_s4 + $0xe0] ss:$16 sps:$4 sm:$0xff]  }
  0xa4   : > { %1043 = vmatprep.subr.bf16.mxu0 %v3281_v1  ;;  %v3286_v4 = vld [vmem:[%s4033_s4 + $0xe8] ss:$16 sps:$4 sm:$0xff]   ;;  %1236 = vmatprep.subr.bf16.mxu1 %v3283_v2  ;;  %v3287_v5 = vld [vmem:[%s4033_s4 + $0xc4] ss:$16 sps:$4 sm:$0xff]   ;;  %v3289_v6 = vld [vmem:[%s4033_s4 + $0xcc] ss:$16 sps:$4 sm:$0xff]  }
  0xa5   : > { %1044 = vmatpush1.bf16.msra.mxu0 %v3285_v3  ;;  %1237 = vmatpush1.bf16.msra.mxu1 %v3286_v4  ;;  %v3291_v7 = vld [vmem:[%s4033_s4 + $0xc0] ss:$16 sps:$4 sm:$0xff]   ;;  %v3292_v8 = vld [vmem:[%s4033_s4 + $0xc8] ss:$16 sps:$4 sm:$0xff]   ;;  %v3293_v9 = vld [vmem:[%s4033_s4 + $0xa4] ss:$16 sps:$4 sm:$0xff]  }
  0xa6   : > { %1045 = vmatprep.subr.bf16.mxu0 %v3287_v5  ;;  %1238 = vmatprep.subr.bf16.mxu1 %v3289_v6  ;;  %v3295_v10 = vld [vmem:[%s4033_s4 + $0xac] ss:$16 sps:$4 sm:$0xff]   ;;  %v3297_v11 = vld [vmem:[%s4033_s4 + $0xa0] ss:$16 sps:$4 sm:$0xff]   ;;  %v3298_v12 = vld [vmem:[%s4033_s4 + $0xa8] ss:$16 sps:$4 sm:$0xff]  }
  0xa7   : > { %v3299_v13 = vld [vmem:[%s4033_s4 + $0x84] ss:$16 sps:$4 sm:$0xff]   ;;  %v3301_v14 = vld [vmem:[%s4033_s4 + $0x8c] ss:$16 sps:$4 sm:$0xff]   ;;  %v3303_v15 = vld [vmem:[%s4033_s4 + $0x80] ss:$16 sps:$4 sm:$0xff]  }
  0xa8   : > { %v3304_v16 = vld [vmem:[%s4033_s4 + $0x88] ss:$16 sps:$4 sm:$0xff]   ;;  %v3305_v17 = vld [vmem:[%s4033_s4 + $0x64] ss:$16 sps:$4 sm:$0xff]   ;;  %v3307_v18 = vld [vmem:[%s4033_s4 + $0x6c] ss:$16 sps:$4 sm:$0xff]  }
  0xa9   : > { %1046 = vmatpush1.bf16.msra.mxu0 %v3291_v7  ;;  %1239 = vmatpush1.bf16.msra.mxu1 %v3292_v8  ;;  %v3309_v19 = vld [vmem:[%s4033_s4 + $0x60] ss:$16 sps:$4 sm:$0xff]   ;;  %v3310_v20 = vld [vmem:[%s4033_s4 + $0x68] ss:$16 sps:$4 sm:$0xff]   ;;  %v3311_v21 = vld [vmem:[%s4033_s4 + $0x44] ss:$16 sps:$4 sm:$0xff]  }
  0xaa   : > { %1047 = vmatprep.subr.bf16.mxu0 %v3293_v9  ;;  %1240 = vmatprep.subr.bf16.mxu1 %v3295_v10  ;;  %v3313_v22 = vld [vmem:[%s4033_s4 + $0x4c] ss:$16 sps:$4 sm:$0xff]   ;;  %v3315_v23 = vld [vmem:[%s4033_s4 + $0x40] ss:$16 sps:$4 sm:$0xff]   ;;  %v3316_v24 = vld [vmem:[%s4033_s4 + $0x48] ss:$16 sps:$4 sm:$0xff]  }
  0xab   : > { %v3317_v25 = vld [vmem:[%s4033_s4 + $0x24] ss:$16 sps:$4 sm:$0xff]   ;;  %v3319_v26 = vld [vmem:[%s4033_s4 + $0x2c] ss:$16 sps:$4 sm:$0xff]   ;;  %v3321_v27 = vld [vmem:[%s4033_s4 + $0x20] ss:$16 sps:$4 sm:$0xff]  }
  0xac   : > { %v3322_v28 = vld [vmem:[%s4033_s4 + $0x28] ss:$16 sps:$4 sm:$0xff]   ;;  %v3323_v29 = vld [vmem:[%s4033_s4 + $0x4] ss:$16 sps:$4 sm:$0xff]   ;;  %v3325_v30 = vld [vmem:[%s4033_s4 + $0xc] ss:$16 sps:$4 sm:$0xff]  }
  0xad   : > { %1048 = vmatpush1.bf16.msra.mxu0 %v3297_v11  ;;  %1241 = vmatpush1.bf16.msra.mxu1 %v3298_v12  ;;  %v3327_v31 = vld [vmem:[%s4033_s4] ss:$16 sps:$4 sm:$0xff]   ;;  %v3328_v32 = vld [vmem:[%s4033_s4 + $0x8] ss:$16 sps:$4 sm:$0xff]   ;;  %v3329_v33 = vld [vmem:[%s4033_s4 + $0x1e4] ss:$16 sps:$4 sm:$0xff]  }
  0xae   : > { %1049 = vmatprep.subr.bf16.mxu0 %v3299_v13  ;;  %1242 = vmatprep.subr.bf16.mxu1 %v3301_v14  ;;  %v3331_v34 = vld [vmem:[%s4033_s4 + $0x1ec] ss:$16 sps:$4 sm:$0xff]   ;;  %v3333_v35 = vld [vmem:[%s4033_s4 + $0x1e0] ss:$16 sps:$4 sm:$0xff]   ;;  %v3334_v36 = vld [vmem:[%s4033_s4 + $0x1e8] ss:$16 sps:$4 sm:$0xff]  }
  0xaf   : > { %v3335_v37 = vld [vmem:[%s4033_s4 + $0x1c4] ss:$16 sps:$4 sm:$0xff]   ;;  %v3337_v38 = vld [vmem:[%s4033_s4 + $0x1cc] ss:$16 sps:$4 sm:$0xff]   ;;  %v3339_v39 = vld [vmem:[%s4033_s4 + $0x1c0] ss:$16 sps:$4 sm:$0xff]  }
  0xb0   : > { %v3340_v40 = vld [vmem:[%s4033_s4 + $0x1c8] ss:$16 sps:$4 sm:$0xff]   ;;  %v3341_v41 = vld [vmem:[%s4033_s4 + $0x1a4] ss:$16 sps:$4 sm:$0xff]   ;;  %v3343_v42 = vld [vmem:[%s4033_s4 + $0x1ac] ss:$16 sps:$4 sm:$0xff]  }
  0xb1   : > { %1050 = vmatpush1.bf16.msra.mxu0 %v3303_v15  ;;  %1243 = vmatpush1.bf16.msra.mxu1 %v3304_v16  ;;  %v3345_v43 = vld [vmem:[%s4033_s4 + $0x1a0] ss:$16 sps:$4 sm:$0xff]   ;;  %v3346_v44 = vld [vmem:[%s4033_s4 + $0x1a8] ss:$16 sps:$4 sm:$0xff]   ;;  %v3347_v45 = vld [vmem:[%s4033_s4 + $0x184] ss:$16 sps:$4 sm:$0xff]  }
  0xb2   : > { %1051 = vmatprep.subr.bf16.mxu0 %v3305_v17  ;;  %1244 = vmatprep.subr.bf16.mxu1 %v3307_v18  ;;  %v3349_v46 = vld [vmem:[%s4033_s4 + $0x18c] ss:$16 sps:$4 sm:$0xff]   ;;  %v3351_v47 = vld [vmem:[%s4033_s4 + $0x180] ss:$16 sps:$4 sm:$0xff]   ;;  %v3352_v48 = vld [vmem:[%s4033_s4 + $0x188] ss:$16 sps:$4 sm:$0xff]  }
  0xb3   : > { %v3379_v49 = vld [vmem:[%s4025_s11 + $0x4] ss:$8 sps:$4 sm:$0xff]   ;;  %v3357_v52 = vld [vmem:[%s4033_s4 + $0x160] ss:$16 sps:$4 sm:$0xff]   ;;  %v3358_v53 = vld [vmem:[%s4033_s4 + $0x168] ss:$16 sps:$4 sm:$0xff]  }
  0xb4   : > { %v3353_v50 = vld [vmem:[%s4033_s4 + $0x164] ss:$16 sps:$4 sm:$0xff]   ;;  %v3355_v51 = vld [vmem:[%s4033_s4 + $0x16c] ss:$16 sps:$4 sm:$0xff]   ;;  %1075 = vmatprep.mubr.bf16.mxu0 %v3379_v49  ;;  %1268 = vmatprep.mubr.bf16.mxu1 %v3379_v49  ;;  %v3363_v56 = vld [vmem:[%s4033_s4 + $0x140] ss:$16 sps:$4 sm:$0xff]  }
  0xb5   : > { %1052 = vmatpush1.bf16.msra.mxu0 %v3309_v19  ;;  %1245 = vmatpush1.bf16.msra.mxu1 %v3310_v20  ;;  %v3359_v54 = vld [vmem:[%s4033_s4 + $0x144] ss:$16 sps:$4 sm:$0xff]   ;;  %v3361_v55 = vld [vmem:[%s4033_s4 + $0x14c] ss:$16 sps:$4 sm:$0xff]   ;;  %v3364_v57 = vld [vmem:[%s4033_s4 + $0x148] ss:$16 sps:$4 sm:$0xff]  }
  0xb6   : > { %1053 = vmatprep.subr.bf16.mxu0 %v3311_v21  ;;  %1246 = vmatprep.subr.bf16.mxu1 %v3313_v22  ;;  %v3365_v58 = vld [vmem:[%s4033_s4 + $0x124] ss:$16 sps:$4 sm:$0xff]   ;;  %v3367_v59 = vld [vmem:[%s4033_s4 + $0x12c] ss:$16 sps:$4 sm:$0xff]   ;;  %v3369_v60 = vld [vmem:[%s4033_s4 + $0x120] ss:$16 sps:$4 sm:$0xff]  }
  0xb7   : > { %v3370_v61 = vld [vmem:[%s4033_s4 + $0x128] ss:$16 sps:$4 sm:$0xff]   ;;  %v3371_v62 = vld [vmem:[%s4033_s4 + $0x104] ss:$16 sps:$4 sm:$0xff]   ;;  %v3373_v63 = vld [vmem:[%s4033_s4 + $0x10c] ss:$16 sps:$4 sm:$0xff]  }
  0xb8   : > { %v3375_v0 = vld [vmem:[%s4033_s4 + $0x100] ss:$16 sps:$4 sm:$0xff]   ;;  %v3376_v1 = vld [vmem:[%s4033_s4 + $0x108] ss:$16 sps:$4 sm:$0xff]   ;;  %v3409_v2 = vld [vmem:[%s4041_s27 + $0x74] ss:$8 sps:$4 sm:$0xff]  }
  0xb9   : > { %1054 = vmatpush1.bf16.msra.mxu0 %v3315_v23  ;;  %1247 = vmatpush1.bf16.msra.mxu1 %v3316_v24  ;;  %v3412_v3 = vld [vmem:[%s4041_s27 + $0x174] ss:$8 sps:$4 sm:$0xff]   ;;  %v3377_v4 = vld [vmem:[%s4025_s11] ss:$8 sps:$4 sm:$0xff]   ;;  %v3418_v8 = vld [vmem:[%s4041_s27 + $0x64] ss:$8 sps:$4 sm:$0xff]  }
  0xba   : > { %1055 = vmatprep.subr.bf16.mxu0 %v3317_v25  ;;  %1248 = vmatprep.subr.bf16.mxu1 %v3319_v26  ;;  %v3380_v5 = vld [vmem:[%s4025_s11 + $0x14] ss:$8 sps:$4 sm:$0xff]   ;;  %v3407_v6 = vld [vmem:[%s4041_s27 + $0x70] ss:$8 sps:$4 sm:$0xff]   ;;  %v3416_v10 = vld [vmem:[%s4041_s27 + $0x60] ss:$8 sps:$4 sm:$0xff]  }
  0xbb   : > { %v3410_v7 = vld [vmem:[%s4041_s27 + $0x170] ss:$8 sps:$4 sm:$0xff]   ;;  %v3421_v9 = vld [vmem:[%s4041_s27 + $0x164] ss:$8 sps:$4 sm:$0xff]   ;;  %v3419_v11 = vld [vmem:[%s4041_s27 + $0x160] ss:$8 sps:$4 sm:$0xff]  }
  0xbc   : > { %v3427_v12 = vld [vmem:[%s4041_s27 + $0x54] ss:$8 sps:$4 sm:$0xff]   ;;  %v3382_v14 = vld [vmem:[%s4025_s11 + $0x10] ss:$8 sps:$4 sm:$0xff]   ;;  %v3436_v18 = vld [vmem:[%s4041_s27 + $0x44] ss:$8 sps:$4 sm:$0xff]  }
  0xbd   : > { %1056 = vmatpush1.bf16.msra.mxu0 %v3321_v27  ;;  %1249 = vmatpush1.bf16.msra.mxu1 %v3322_v28  ;;  %v3430_v13 = vld [vmem:[%s4041_s27 + $0x154] ss:$8 sps:$4 sm:$0xff]   ;;  %v3425_v16 = vld [vmem:[%s4041_s27 + $0x50] ss:$8 sps:$4 sm:$0xff]   ;;  %v3439_v19 = vld [vmem:[%s4041_s27 + $0x144] ss:$8 sps:$4 sm:$0xff]  }
  0xbe   : > { %1057 = vmatprep.subr.bf16.mxu0 %v3323_v29  ;;  %1250 = vmatprep.subr.bf16.mxu1 %v3325_v30  ;;  %v3383_v15 = vld [vmem:[%s4025_s11 + $0x24] ss:$8 sps:$4 sm:$0xff]   ;;  %v3428_v17 = vld [vmem:[%s4041_s27 + $0x150] ss:$8 sps:$4 sm:$0xff]   ;;  %v3434_v20 = vld [vmem:[%s4041_s27 + $0x40] ss:$8 sps:$4 sm:$0xff]  }
  0xbf   : > { %v3437_v21 = vld [vmem:[%s4041_s27 + $0x140] ss:$8 sps:$4 sm:$0xff]   ;;  %v3445_v22 = vld [vmem:[%s4041_s27 + $0x34] ss:$8 sps:$4 sm:$0xff]   ;;  %v3443_v26 = vld [vmem:[%s4041_s27 + $0x30] ss:$8 sps:$4 sm:$0xff]  }
  0xc0   : > { %v3448_v23 = vld [vmem:[%s4041_s27 + $0x134] ss:$8 sps:$4 sm:$0xff]   ;;  %v3385_v24 = vld [vmem:[%s4025_s11 + $0x20] ss:$8 sps:$4 sm:$0xff]   ;;  %v3454_v28 = vld [vmem:[%s4041_s27 + $0x24] ss:$8 sps:$4 sm:$0xff]  }
  0xc1   : > { %1058 = vmatpush1.bf16.msra.mxu0 %v3327_v31  ;;  %1251 = vmatpush1.bf16.msra.mxu1 %v3328_v32  ;;  %v3386_v25 = vld [vmem:[%s4025_s11 + $0x34] ss:$8 sps:$4 sm:$0xff]   ;;  %v3446_v27 = vld [vmem:[%s4041_s27 + $0x130] ss:$8 sps:$4 sm:$0xff]   ;;  %v3452_v30 = vld [vmem:[%s4041_s27 + $0x20] ss:$8 sps:$4 sm:$0xff]  }
  0xc2   : > { %1059 = vmatprep.subr.bf16.mxu0 %v3329_v33  ;;  %1252 = vmatprep.subr.bf16.mxu1 %v3331_v34  ;;  %v3457_v29 = vld [vmem:[%s4041_s27 + $0x124] ss:$8 sps:$4 sm:$0xff]   ;;  %v3455_v31 = vld [vmem:[%s4041_s27 + $0x120] ss:$8 sps:$4 sm:$0xff]   ;;  %v3463_v32 = vld [vmem:[%s4041_s27 + $0x14] ss:$8 sps:$4 sm:$0xff]  }
  0xc3   : > { %v3466_v33 = vld [vmem:[%s4041_s27 + $0x114] ss:$8 sps:$4 sm:$0xff]   ;;  %v3388_v34 = vld [vmem:[%s4025_s11 + $0x30] ss:$8 sps:$4 sm:$0xff]   ;;  %v3484_v49 = vld [vmem:[%s4041_s27 + $0x1e4] ss:$8 sps:$4 sm:$0xff]  }
  0xc4   : > { %p3141_p8 = scmp.ne.s32.totalorder %s3745_s24, 1 }
  0xc5   : > { %1060 = vmatpush2.bf16.msra.mxu0 %v3333_v35  ;;  %1253 = vmatpush2.bf16.msra.mxu1 %v3334_v36  ;;  %v3389_v35 = vld [vmem:[%s4025_s11 + $0x44] ss:$8 sps:$4 sm:$0xff]   ;;  %v3461_v36 = vld [vmem:[%s4041_s27 + $0x10] ss:$8 sps:$4 sm:$0xff]   ;;  %s4677_s8 = sld [smem:[#allocation28_spill]] (!%p3141_p8) }
  0xc6   : > { %1061 = vmatprep.subr.bf16.mxu0 %v3335_v37  ;;  %1254 = vmatprep.subr.bf16.mxu1 %v3337_v38  ;;  %v3464_v37 = vld [vmem:[%s4041_s27 + $0x110] ss:$8 sps:$4 sm:$0xff]   ;;  %v3469_v38 = vld [vmem:[%s4041_s27 + $0x4] ss:$8 sps:$4 sm:$0xff]  }
  0xc9   : > { %1062 = vmatpush2.bf16.msra.mxu0 %v3339_v39  ;;  %1255 = vmatpush2.bf16.msra.mxu1 %v3340_v40  ;;  %v3472_v39 = vld [vmem:[%s4041_s27 + $0x104] ss:$8 sps:$4 sm:$0xff]   ;;  %v3467_v40 = vld [vmem:[%s4041_s27] ss:$8 sps:$4 sm:$0xff]  }
  0xca   : > { %1063 = vmatprep.subr.bf16.mxu0 %v3341_v41  ;;  %1256 = vmatprep.subr.bf16.mxu1 %v3343_v42  ;;  %v3470_v41 = vld [vmem:[%s4041_s27 + $0x100] ss:$8 sps:$4 sm:$0xff]   ;;  %v3475_v42 = vld [vmem:[%s4041_s27 + $0xf4] ss:$8 sps:$4 sm:$0xff]  }
  0xcd   : > { %1064 = vmatpush2.bf16.msra.mxu0 %v3345_v43  ;;  %1257 = vmatpush2.bf16.msra.mxu1 %v3346_v44  ;;  %v3478_v43 = vld [vmem:[%s4041_s27 + $0x1f4] ss:$8 sps:$4 sm:$0xff]   ;;  %v3391_v44 = vld [vmem:[%s4025_s11 + $0x40] ss:$8 sps:$4 sm:$0xff]  }
  0xce   : > { %1065 = vmatprep.subr.bf16.mxu0 %v3347_v45  ;;  %1258 = vmatprep.subr.bf16.mxu1 %v3349_v46  ;;  %v3392_v45 = vld [vmem:[%s4025_s11 + $0x54] ss:$8 sps:$4 sm:$0xff]   ;;  %v3473_v46 = vld [vmem:[%s4041_s27 + $0xf0] ss:$8 sps:$4 sm:$0xff]  }
  0xd1   : > { %1066 = vmatpush2.bf16.msra.mxu0 %v3351_v47  ;;  %1259 = vmatpush2.bf16.msra.mxu1 %v3352_v48  ;;  %v3476_v47 = vld [vmem:[%s4041_s27 + $0x1f0] ss:$8 sps:$4 sm:$0xff]   ;;  %v3481_v48 = vld [vmem:[%s4041_s27 + $0xe4] ss:$8 sps:$4 sm:$0xff]  }
  0xd2   : > { %1067 = vmatprep.subr.bf16.mxu0 %v3353_v50  ;;  %1260 = vmatprep.subr.bf16.mxu1 %v3355_v51  ;;  %v3479_v50 = vld [vmem:[%s4041_s27 + $0xe0] ss:$8 sps:$4 sm:$0xff]  }
  0xd3   : > { %v3482_v51 = vld [vmem:[%s4041_s27 + $0x1e0] ss:$8 sps:$4 sm:$0xff]  }
  0xd5   : > { %1068 = vmatpush2.bf16.msra.mxu0 %v3357_v52  ;;  %1261 = vmatpush2.bf16.msra.mxu1 %v3358_v53  ;;  %v3487_v52 = vld [vmem:[%s4041_s27 + $0xd4] ss:$8 sps:$4 sm:$0xff]  }
  0xd6   : > { %1069 = vmatprep.subr.bf16.mxu0 %v3359_v54  ;;  %1262 = vmatprep.subr.bf16.mxu1 %v3361_v55  ;;  %v3490_v53 = vld [vmem:[%s4041_s27 + $0x1d4] ss:$8 sps:$4 sm:$0xff]   ;;  %v3394_v54 = vld [vmem:[%s4025_s11 + $0x50] ss:$8 sps:$4 sm:$0xff]  }
  0xd7   : > { %v3395_v55 = vld [vmem:[%s4025_s11 + $0x64] ss:$8 sps:$4 sm:$0xff]  }
  0xd9   : > { %1070 = vmatpush2.bf16.msra.mxu0 %v3363_v56  ;;  %1263 = vmatpush2.bf16.msra.mxu1 %v3364_v57  ;;  %v3485_v56 = vld [vmem:[%s4041_s27 + $0xd0] ss:$8 sps:$4 sm:$0xff]  }
  0xda   : > { %1071 = vmatprep.subr.bf16.mxu0 %v3365_v58  ;;  %1264 = vmatprep.subr.bf16.mxu1 %v3367_v59  ;;  %v3488_v57 = vld [vmem:[%s4041_s27 + $0x1d0] ss:$8 sps:$4 sm:$0xff]   ;;  %v3493_v58 = vld [vmem:[%s4041_s27 + $0xc4] ss:$8 sps:$4 sm:$0xff]  }
  0xdb   : > { %v3496_v59 = vld [vmem:[%s4041_s27 + $0x1c4] ss:$8 sps:$4 sm:$0xff]  }
  0xdd   : > { %1072 = vmatpush2.bf16.msra.mxu0 %v3369_v60  ;;  %1265 = vmatpush2.bf16.msra.mxu1 %v3370_v61  ;;  %v3491_v60 = vld [vmem:[%s4041_s27 + $0xc0] ss:$8 sps:$4 sm:$0xff]  }
  0xde   : > { %1073 = vmatprep.subr.bf16.mxu0 %v3371_v62  ;;  %1266 = vmatprep.subr.bf16.mxu1 %v3373_v63  ;;  %v3494_v61 = vld [vmem:[%s4041_s27 + $0x1c0] ss:$8 sps:$4 sm:$0xff]   ;;  %v3499_v62 = vld [vmem:[%s4041_s27 + $0xb4] ss:$8 sps:$4 sm:$0xff]  }
  0xdf   : > { %v3502_v63 = vld [vmem:[%s4041_s27 + $0x1b4] ss:$8 sps:$4 sm:$0xff]  }
  0xe1   : > { %1074 = vmatpush2.bf16.msra.mxu0 %v3375_v0  ;;  %1267 = vmatpush2.bf16.msra.mxu1 %v3376_v1  ;;  %v3397_v0 = vld [vmem:[%s4025_s11 + $0x60] ss:$8 sps:$4 sm:$0xff]   ;;  %v3398_v1 = vld [vmem:[%s4025_s11 + $0x74] ss:$8 sps:$4 sm:$0xff]  }
  0xe2   : > { %2069 = vmatprep.subr.bf16.mxu0 %v3409_v2  ;;  %2262 = vmatprep.subr.bf16.mxu1 %v3412_v3  ;;  %v3497_v2 = vld [vmem:[%s4041_s27 + $0xb0] ss:$8 sps:$4 sm:$0xff]  }
  0xe3   : > { %v3500_v3 = vld [vmem:[%s4041_s27 + $0x1b0] ss:$8 sps:$4 sm:$0xff]  }
  0xe4   : > { %1076 = vmatmul.mubr.bf16.vlgmr.msra.gmra.mxu0 %v3377_v4  ;;  %1269 = vmatmul.mubr.bf16.vlgmr.msra.gmra.mxu1 %v3377_v4  ;;  %v3505_v4 = vld [vmem:[%s4041_s27 + $0xa4] ss:$8 sps:$4 sm:$0xff]  }
  0xe5   : > { %1085 = vmatprep.mubr.bf16.mxu0 %v3380_v5  ;;  %1278 = vmatprep.mubr.bf16.mxu1 %v3380_v5  ;;  %v3508_v5 = vld [vmem:[%s4041_s27 + $0x1a4] ss:$8 sps:$4 sm:$0xff]  }
  0xe6   : > { %2070 = vmatpush1.bf16.msra.mxu0 %v3407_v6  ;;  %2263 = vmatpush1.bf16.msra.mxu1 %v3410_v7  ;;  %v3503_v6 = vld [vmem:[%s4041_s27 + $0xa0] ss:$8 sps:$4 sm:$0xff]  }
  0xe7   : > { %2071 = vmatprep.subr.bf16.mxu0 %v3418_v8  ;;  %2264 = vmatprep.subr.bf16.mxu1 %v3421_v9  ;;  %v3506_v7 = vld [vmem:[%s4041_s27 + $0x1a0] ss:$8 sps:$4 sm:$0xff]   ;;  %v3511_v8 = vld [vmem:[%s4041_s27 + $0x94] ss:$8 sps:$4 sm:$0xff]  }
  0xe8   : > { %v3514_v9 = vld [vmem:[%s4041_s27 + $0x194] ss:$8 sps:$4 sm:$0xff]  }
  0xea   : > { %2072 = vmatpush1.bf16.msra.mxu0 %v3416_v10  ;;  %2265 = vmatpush1.bf16.msra.mxu1 %v3419_v11  ;;  %v3400_v10 = vld [vmem:[%s4025_s11 + $0x70] ss:$8 sps:$4 sm:$0xff]   ;;  %v3401_v11 = vld [vmem:[%s4025_s11 + $0x84] ss:$8 sps:$4 sm:$0xff]  }
  0xeb   : > { %2073 = vmatprep.subr.bf16.mxu0 %v3427_v12  ;;  %2266 = vmatprep.subr.bf16.mxu1 %v3430_v13  ;;  %v3509_v12 = vld [vmem:[%s4041_s27 + $0x90] ss:$8 sps:$4 sm:$0xff]  }
  0xec   : > { %1086 = vmatmul.mubr.bf16.gmra.mxu0 %v3382_v14  ;;  %1279 = vmatmul.mubr.bf16.gmra.mxu1 %v3382_v14  ;;  %v3512_v13 = vld [vmem:[%s4041_s27 + $0x190] ss:$8 sps:$4 sm:$0xff]  }
  0xed   : > { %1095 = vmatprep.mubr.bf16.mxu0 %v3383_v15  ;;  %1288 = vmatprep.mubr.bf16.mxu1 %v3383_v15  ;;  %v3403_v14 = vld [vmem:[%s4025_s11 + $0x80] ss:$8 sps:$4 sm:$0xff]   ;;  %v3404_v15 = vld [vmem:[%s4025_s11 + $0x94] ss:$8 sps:$4 sm:$0xff]  }
  0xee   : > { %2074 = vmatpush1.bf16.msra.mxu0 %v3425_v16  ;;  %2267 = vmatpush1.bf16.msra.mxu1 %v3428_v17  ;;  %v3406_v16 = vld [vmem:[%s4025_s11 + $0x90] ss:$8 sps:$4 sm:$0xff]   ;;  %v3413_v17 = vld [vmem:[%s4025_s11 + $0xa4] ss:$8 sps:$4 sm:$0xff]  }
  0xef   : > { %2075 = vmatprep.subr.bf16.mxu0 %v3436_v18  ;;  %2268 = vmatprep.subr.bf16.mxu1 %v3439_v19  ;;  %v3517_v18 = vld [vmem:[%s4041_s27 + $0x84] ss:$8 sps:$4 sm:$0xff]  }
  0xf0   : > { %v3520_v19 = vld [vmem:[%s4041_s27 + $0x184] ss:$8 sps:$4 sm:$0xff]  }
  0xf2   : > { %2076 = vmatpush1.bf16.msra.mxu0 %v3434_v20  ;;  %2269 = vmatpush1.bf16.msra.mxu1 %v3437_v21  ;;  %v3515_v20 = vld [vmem:[%s4041_s27 + $0x80] ss:$8 sps:$4 sm:$0xff]  }
  0xf3   : > { %2077 = vmatprep.subr.bf16.mxu0 %v3445_v22  ;;  %2270 = vmatprep.subr.bf16.mxu1 %v3448_v23  ;;  %v3518_v21 = vld [vmem:[%s4041_s27 + $0x180] ss:$8 sps:$4 sm:$0xff]   ;;  %v3422_v23 = vld [vmem:[%s4025_s11 + $0xb4] ss:$8 sps:$4 sm:$0xff]  }
  0xf4   : > { %1096 = vmatmul.mubr.bf16.gmra.mxu0 %v3385_v24  ;;  %1289 = vmatmul.mubr.bf16.gmra.mxu1 %v3385_v24  ;;  %v3415_v22 = vld [vmem:[%s4025_s11 + $0xa0] ss:$8 sps:$4 sm:$0xff]   ;;  %v3424_v24 = vld [vmem:[%s4025_s11 + $0xb0] ss:$8 sps:$4 sm:$0xff]  }
  0xf5   : > { %1105 = vmatprep.mubr.bf16.mxu0 %v3386_v25  ;;  %1298 = vmatprep.mubr.bf16.mxu1 %v3386_v25  ;;  %v3431_v25 = vld [vmem:[%s4025_s11 + $0xc4] ss:$8 sps:$4 sm:$0xff]  }
  0xf6   : > { %2078 = vmatpush1.bf16.msra.mxu0 %v3443_v26  ;;  %2271 = vmatpush1.bf16.msra.mxu1 %v3446_v27  ;;  %v3433_v26 = vld [vmem:[%s4025_s11 + $0xc0] ss:$8 sps:$4 sm:$0xff]   ;;  %v3440_v27 = vld [vmem:[%s4025_s11 + $0xd4] ss:$8 sps:$4 sm:$0xff]  }
  0xf7   : > { %2079 = vmatprep.subr.bf16.mxu0 %v3454_v28  ;;  %2272 = vmatprep.subr.bf16.mxu1 %v3457_v29  ;;  %v3442_v28 = vld [vmem:[%s4025_s11 + $0xd0] ss:$8 sps:$4 sm:$0xff]   ;;  %v3449_v29 = vld [vmem:[%s4025_s11 + $0xe4] ss:$8 sps:$4 sm:$0xff]  }
  0xfa   : > { %2080 = vmatpush1.bf16.msra.mxu0 %v3452_v30  ;;  %2273 = vmatpush1.bf16.msra.mxu1 %v3455_v31  ;;  %v3451_v30 = vld [vmem:[%s4025_s11 + $0xe0] ss:$8 sps:$4 sm:$0xff]   ;;  %v3458_v31 = vld [vmem:[%s4025_s11 + $0xf4] ss:$8 sps:$4 sm:$0xff]  }
  0xfb   : > { %2081 = vmatprep.subr.bf16.mxu0 %v3463_v32  ;;  %2274 = vmatprep.subr.bf16.mxu1 %v3466_v33  ;;  %v3460_v32 = vld [vmem:[%s4025_s11 + $0xf0] ss:$8 sps:$4 sm:$0xff]   ;;  %v543_v33 = vlaneseq }
  0xfc   : > { %1106 = vmatmul.mubr.bf16.gmra.mxu0 %v3388_v34  ;;  %1299 = vmatmul.mubr.bf16.gmra.mxu1 %v3388_v34 }
  0xfd   : > { %1115 = vmatprep.mubr.bf16.mxu0 %v3389_v35  ;;  %1308 = vmatprep.mubr.bf16.mxu1 %v3389_v35  ;;  %v4275_v34 = vshrl.u32 %v543_v33, 7 }
  0xfe   : > { %2082 = vmatpush1.bf16.msra.mxu0 %v3461_v36  ;;  %2275 = vmatpush1.bf16.msra.mxu1 %v3464_v37 }
  0xff   : > { %2083 = vmatprep.subr.bf16.mxu0 %v3469_v38  ;;  %2276 = vmatprep.subr.bf16.mxu1 %v3472_v39  ;;  %v549_v35 = vsub.s32 1, %v4275_v34  ;;  %v557_v36 = vsub.s32 3, %v4275_v34  ;;  %v545_v37 = vsub.s32 0, %v4275_v34  ;;  %v553_v38 = vsub.s32 2, %v4275_v34  ;;  %v541_v39 = vld [vmem:[%s4039_s10] sm:$0xf] }
 0x102   : > { %2084 = vmatpush1.bf16.msra.mxu0 %v3467_v40  ;;  %2277 = vmatpush1.bf16.msra.mxu1 %v3470_v41 }
 0x103   : > { %2085 = vmatprep.subr.bf16.mxu0 %v3475_v42  ;;  %2278 = vmatprep.subr.bf16.mxu1 %v3478_v43  ;;  %v4284_v42 = vrot.slane %v541_v39, %v549_v35  ;;  %v4286_v43 = vrot.slane %v541_v39, %v557_v36 }
 0x104   : > { %1116 = vmatmul.mubr.bf16.gmra.mxu0 %v3391_v44  ;;  %1309 = vmatmul.mubr.bf16.gmra.mxu1 %v3391_v44  ;;  %v4290_v44 = vrot.slane %v541_v39, %v545_v37 }
 0x105   : > { %1125 = vmatprep.mubr.bf16.mxu0 %v3392_v45  ;;  %1318 = vmatprep.mubr.bf16.mxu1 %v3392_v45  ;;  %v4292_v45 = vrot.slane %v541_v39, %v553_v38 }
 0x106   : > { %2086 = vmatpush2.bf16.msra.mxu0 %v3473_v46  ;;  %2279 = vmatpush2.bf16.msra.mxu1 %v3476_v47 }
 0x107   : > { %2087 = vmatprep.subr.bf16.mxu0 %v3481_v48  ;;  %2280 = vmatprep.subr.bf16.mxu1 %v3484_v49 }
 0x10a   : > { %2088 = vmatpush2.bf16.msra.mxu0 %v3479_v50  ;;  %2281 = vmatpush2.bf16.msra.mxu1 %v3482_v51 }
 0x10b   : > { %2089 = vmatprep.subr.bf16.mxu0 %v3487_v52  ;;  %2282 = vmatprep.subr.bf16.mxu1 %v3490_v53 }
 0x10c   : > { %1126 = vmatmul.mubr.bf16.gmra.mxu0 %v3394_v54  ;;  %1319 = vmatmul.mubr.bf16.gmra.mxu1 %v3394_v54 }
 0x10d   : > { %1135 = vmatprep.mubr.bf16.mxu0 %v3395_v55  ;;  %1328 = vmatprep.mubr.bf16.mxu1 %v3395_v55 }
 0x10e   : > { %2090 = vmatpush2.bf16.msra.mxu0 %v3485_v56  ;;  %2283 = vmatpush2.bf16.msra.mxu1 %v3488_v57 }
 0x10f   : > { %2091 = vmatprep.subr.bf16.mxu0 %v3493_v58  ;;  %2284 = vmatprep.subr.bf16.mxu1 %v3496_v59 }
 0x112   : > { %2092 = vmatpush2.bf16.msra.mxu0 %v3491_v60  ;;  %2285 = vmatpush2.bf16.msra.mxu1 %v3494_v61 }
 0x113   : > { %2093 = vmatprep.subr.bf16.mxu0 %v3499_v62  ;;  %2286 = vmatprep.subr.bf16.mxu1 %v3502_v63 }
 0x114   : > { %1136 = vmatmul.mubr.bf16.gmra.mxu0 %v3397_v0  ;;  %1329 = vmatmul.mubr.bf16.gmra.mxu1 %v3397_v0 }
 0x115   : > { %1145 = vmatprep.mubr.bf16.mxu0 %v3398_v1  ;;  %1338 = vmatprep.mubr.bf16.mxu1 %v3398_v1 }
 0x116   : > { %2094 = vmatpush2.bf16.msra.mxu0 %v3497_v2  ;;  %2287 = vmatpush2.bf16.msra.mxu1 %v3500_v3 }
 0x117   : > { %2095 = vmatprep.subr.bf16.mxu0 %v3505_v4  ;;  %2288 = vmatprep.subr.bf16.mxu1 %v3508_v5 }
 0x11a   : > { %2096 = vmatpush2.bf16.msra.mxu0 %v3503_v6  ;;  %2289 = vmatpush2.bf16.msra.mxu1 %v3506_v7 }
 0x11b   : > { %2097 = vmatprep.subr.bf16.mxu0 %v3511_v8  ;;  %2290 = vmatprep.subr.bf16.mxu1 %v3514_v9 }
 0x11c   : > { %1146 = vmatmul.mubr.bf16.gmra.mxu0 %v3400_v10  ;;  %1339 = vmatmul.mubr.bf16.gmra.mxu1 %v3400_v10 }
 0x11d   : > { %1155 = vmatprep.mubr.bf16.mxu0 %v3401_v11  ;;  %1348 = vmatprep.mubr.bf16.mxu1 %v3401_v11 }
 0x11e   : > { %2098 = vmatpush2.bf16.msra.mxu0 %v3509_v12  ;;  %2291 = vmatpush2.bf16.msra.mxu1 %v3512_v13 }
 0x11f   : > { %2099 = vmatprep.subr.bf16.mxu0 %v3517_v18  ;;  %2292 = vmatprep.subr.bf16.mxu1 %v3520_v19 }
 0x122   : > { %2100 = vmatpush2.bf16.msra.mxu0 %v3515_v20  ;;  %2293 = vmatpush2.bf16.msra.mxu1 %v3518_v21 }
 0x124   : > { %1156 = vmatmul.mubr.bf16.gmra.mxu0 %v3403_v14  ;;  %1349 = vmatmul.mubr.bf16.gmra.mxu1 %v3403_v14 }
 0x125   : > { %1165 = vmatprep.mubr.bf16.mxu0 %v3404_v15  ;;  %1358 = vmatprep.mubr.bf16.mxu1 %v3404_v15 }
 0x12c   : > { %1166 = vmatmul.mubr.bf16.gmra.mxu0 %v3406_v16  ;;  %1359 = vmatmul.mubr.bf16.gmra.mxu1 %v3406_v16 }
 0x12d   : > { %1175 = vmatprep.mubr.bf16.mxu0 %v3413_v17  ;;  %1368 = vmatprep.mubr.bf16.mxu1 %v3413_v17 }
 0x134   : > { %1176 = vmatmul.mubr.bf16.gmra.mxu0 %v3415_v22  ;;  %1369 = vmatmul.mubr.bf16.gmra.mxu1 %v3415_v22 }
 0x135   : > { %1185 = vmatprep.mubr.bf16.mxu0 %v3422_v23  ;;  %1378 = vmatprep.mubr.bf16.mxu1 %v3422_v23 }
 0x13c   : > { %1186 = vmatmul.mubr.bf16.gmra.mxu0 %v3424_v24  ;;  %1379 = vmatmul.mubr.bf16.gmra.mxu1 %v3424_v24 }
 0x13d   : > { %1195 = vmatprep.mubr.bf16.mxu0 %v3431_v25  ;;  %1388 = vmatprep.mubr.bf16.mxu1 %v3431_v25 }
 0x144   : > { %1196 = vmatmul.mubr.bf16.gmra.mxu0 %v3433_v26  ;;  %1389 = vmatmul.mubr.bf16.gmra.mxu1 %v3433_v26 }
 0x145   : > { %1205 = vmatprep.mubr.bf16.mxu0 %v3440_v27  ;;  %1398 = vmatprep.mubr.bf16.mxu1 %v3440_v27 }
 0x14c   : > { %1206 = vmatmul.mubr.bf16.gmra.mxu0 %v3442_v28  ;;  %1399 = vmatmul.mubr.bf16.gmra.mxu1 %v3442_v28 }
 0x14d   : > { %1215 = vmatprep.mubr.bf16.mxu0 %v3449_v29  ;;  %1408 = vmatprep.mubr.bf16.mxu1 %v3449_v29 }
 0x154   : > { %1216 = vmatmul.mubr.bf16.gmra.mxu0 %v3451_v30  ;;  %1409 = vmatmul.mubr.bf16.gmra.mxu1 %v3451_v30 }
 0x155   : > { %1225 = vmatprep.mubr.bf16.mxu0 %v3458_v31  ;;  %1418 = vmatprep.mubr.bf16.mxu1 %v3458_v31 }
 0x15c   : > { %1226 = vmatmul.mubr.bf16.gmra.mxu0 %v3460_v32  ;;  %1419 = vmatmul.mubr.bf16.gmra.mxu1 %v3460_v32 }
 0x1a4   : > { %v1077_v40 = vpop.f32.mrf.mxu0  ;;  %v1270_v41 = vpop.f32.mrf.mxu1 }
 0x1a5   : > { %v1078_v54 = vadd.f32 %v1077_v40, %v4290_v44  ;;  %v1271_v55 = vadd.f32 %v1270_v41, %v4292_v45 }
 0x1a6   : > { %v1079_v46 = vpop.f32.mrf.mxu0  ;;  %v1272_v47 = vpop.f32.mrf.mxu1 }
 0x1a7   : > { %v1080_v50 = vadd.f32 %v1079_v46, %v4284_v42  ;;  %v1273_v51 = vadd.f32 %v1272_v47, %v4286_v43  ;;  %v1429_v4 = vmax.f32 %v1078_v54, 0.0  ;;  %v1431_v5 = vmax.f32 %v1271_v55, 0.0 }
 0x1a8   : > { %v1081_v48 = vpop.f32.mrf.mxu0  ;;  %v1274_v49 = vpop.f32.mrf.mxu1 }
 0x1a9   : > { %v1082_v52 = vadd.f32 %v1081_v48, %v4290_v44  ;;  %v1275_v53 = vadd.f32 %v1274_v49, %v4292_v45  ;;  %v1430_v0 = vmax.f32 %v1080_v50, 0.0  ;;  %v1432_v1 = vmax.f32 %v1273_v51, 0.0 }
 0x1aa   : > { %v1083_v56 = vpop.f32.mrf.mxu0  ;;  %v1276_v57 = vpop.f32.mrf.mxu1 }
 0x1ab   : > { %v1084_v58 = vadd.f32 %v1083_v56, %v4284_v42  ;;  %v1277_v59 = vadd.f32 %v1276_v57, %v4286_v43  ;;  %v1433_v60 = vmax.f32 %v1082_v52, 0.0  ;;  %v1435_v61 = vmax.f32 %v1275_v53, 0.0 }
 0x1ac   : > { %v1087_v62 = vpop.f32.mrf.mxu0  ;;  %v1280_v63 = vpop.f32.mrf.mxu1 }
 0x1ad   : > { %v1434_v2 = vmax.f32 %v1084_v58, 0.0  ;;  %v1436_v3 = vmax.f32 %v1277_v59, 0.0  ;;  %v1621_v10 = vpack.c.bf16 %v1433_v60, %v1429_v4  ;;  %v1623_v11 = vpack.c.bf16 %v1435_v61, %v1431_v5 }
 0x1ae   : > { %v1089_v6 = vpop.f32.mrf.mxu0  ;;  %v1282_v7 = vpop.f32.mrf.mxu1  ;;  %v1088_v18 = vadd.f32 %v1087_v62, %v4290_v44  ;;  %v1281_v19 = vadd.f32 %v1280_v63, %v4292_v45 }
 0x1af   : > { %v1622_v8 = vpack.c.bf16 %v1434_v2, %v1430_v0  ;;  %v1624_v9 = vpack.c.bf16 %v1436_v3, %v1432_v1  ;;  %v1090_v12 = vadd.f32 %v1089_v6, %v4284_v42  ;;  %v1283_v15 = vadd.f32 %v1282_v7, %v4286_v43 }
 0x1b0   : > { %v1091_v13 = vpop.f32.mrf.mxu0  ;;  %v1284_v14 = vpop.f32.mrf.mxu1  ;;  %v1437_v32 = vmax.f32 %v1088_v18, 0.0  ;;  %v1439_v33 = vmax.f32 %v1281_v19, 0.0 }
 0x1b1   : > { %v1092_v16 = vadd.f32 %v1091_v13, %v4290_v44  ;;  %v1285_v17 = vadd.f32 %v1284_v14, %v4292_v45  ;;  %2101 = vmatprep.mubr.bf16.mxu0 %v1622_v8  ;;  %2294 = vmatprep.mubr.bf16.mxu1 %v1624_v9  ;;  %v1438_v28 = vmax.f32 %v1090_v12, 0.0  ;;  %v1440_v29 = vmax.f32 %v1283_v15, 0.0 }
 0x1b2   : > { %v1093_v20 = vpop.f32.mrf.mxu0  ;;  %v1286_v21 = vpop.f32.mrf.mxu1  ;;  %2102 = vmatmul.mubr.bf16.vlgmr.msra.gmra.mxu0 %v1621_v10  ;;  %2295 = vmatmul.mubr.bf16.vlgmr.msra.gmra.mxu1 %v1623_v11 }
 0x1b3   : > { %v1094_v22 = vadd.f32 %v1093_v20, %v4284_v42  ;;  %v1287_v23 = vadd.f32 %v1286_v21, %v4286_v43  ;;  %v1441_v24 = vmax.f32 %v1092_v16, 0.0  ;;  %v1443_v25 = vmax.f32 %v1285_v17, 0.0 }
 0x1b4   : > { %v1097_v26 = vpop.f32.mrf.mxu0  ;;  %v1290_v27 = vpop.f32.mrf.mxu1 }
 0x1b5   : > { %v1442_v30 = vmax.f32 %v1094_v22, 0.0  ;;  %v1444_v31 = vmax.f32 %v1287_v23, 0.0  ;;  %v1625_v41 = vpack.c.bf16 %v1441_v24, %v1437_v32  ;;  %v1627_v46 = vpack.c.bf16 %v1443_v25, %v1439_v33 }
 0x1b6   : > { %v1099_v36 = vpop.f32.mrf.mxu0  ;;  %v1292_v38 = vpop.f32.mrf.mxu1  ;;  %v1098_v53 = vadd.f32 %v1097_v26, %v4290_v44  ;;  %v1291_v54 = vadd.f32 %v1290_v27, %v4292_v45 }
 0x1b7   : > { %v1626_v39 = vpack.c.bf16 %v1442_v30, %v1438_v28  ;;  %v1628_v40 = vpack.c.bf16 %v1444_v31, %v1440_v29  ;;  %v1100_v47 = vadd.f32 %v1099_v36, %v4284_v42  ;;  %v1293_v50 = vadd.f32 %v1292_v38, %v4286_v43 }
 0x1b8   : > { %v1101_v48 = vpop.f32.mrf.mxu0  ;;  %v1294_v49 = vpop.f32.mrf.mxu1  ;;  %v1445_v3 = vmax.f32 %v1098_v53, 0.0  ;;  %v1447_v4 = vmax.f32 %v1291_v54, 0.0 }
 0x1b9   : > { %v1102_v51 = vadd.f32 %v1101_v48, %v4290_v44  ;;  %v1295_v52 = vadd.f32 %v1294_v49, %v4292_v45  ;;  %2111 = vmatprep.mubr.bf16.mxu0 %v1626_v39  ;;  %2304 = vmatprep.mubr.bf16.mxu1 %v1628_v40  ;;  %v1446_v63 = vmax.f32 %v1100_v47, 0.0  ;;  %v1448_v0 = vmax.f32 %v1293_v50, 0.0 }
 0x1ba   : > { %v1103_v55 = vpop.f32.mrf.mxu0  ;;  %v1296_v56 = vpop.f32.mrf.mxu1  ;;  %2112 = vmatmul.mubr.bf16.gmra.mxu0 %v1625_v41  ;;  %2305 = vmatmul.mubr.bf16.gmra.mxu1 %v1627_v46 }
 0x1bb   : > { %v1104_v57 = vadd.f32 %v1103_v55, %v4284_v42  ;;  %v1297_v58 = vadd.f32 %v1296_v56, %v4286_v43  ;;  %v1449_v59 = vmax.f32 %v1102_v51, 0.0  ;;  %v1451_v60 = vmax.f32 %v1295_v52, 0.0 }
 0x1bc   : > { %v1107_v61 = vpop.f32.mrf.mxu0  ;;  %v1300_v62 = vpop.f32.mrf.mxu1 }
 0x1bd   : > { %v1450_v1 = vmax.f32 %v1104_v57, 0.0  ;;  %v1452_v2 = vmax.f32 %v1297_v58, 0.0  ;;  %v1629_v9 = vpack.c.bf16 %v1449_v59, %v1445_v3  ;;  %v1631_v10 = vpack.c.bf16 %v1451_v60, %v1447_v4 }
 0x1be   : > { %v1109_v5 = vpop.f32.mrf.mxu0  ;;  %v1302_v6 = vpop.f32.mrf.mxu1  ;;  %v1108_v17 = vadd.f32 %v1107_v61, %v4290_v44  ;;  %v1301_v18 = vadd.f32 %v1300_v62, %v4292_v45 }
 0x1bf   : > { %v1630_v7 = vpack.c.bf16 %v1450_v1, %v1446_v63  ;;  %v1632_v8 = vpack.c.bf16 %v1452_v2, %v1448_v0  ;;  %v1110_v11 = vadd.f32 %v1109_v5, %v4284_v42  ;;  %v1303_v14 = vadd.f32 %v1302_v6, %v4286_v43 }
 0x1c0   : > { %v1111_v12 = vpop.f32.mrf.mxu0  ;;  %v1304_v13 = vpop.f32.mrf.mxu1  ;;  %v1453_v31 = vmax.f32 %v1108_v17, 0.0  ;;  %v1455_v32 = vmax.f32 %v1301_v18, 0.0 }
 0x1c1   : > { %v1112_v15 = vadd.f32 %v1111_v12, %v4290_v44  ;;  %v1305_v16 = vadd.f32 %v1304_v13, %v4292_v45  ;;  %2121 = vmatprep.mubr.bf16.mxu0 %v1630_v7  ;;  %2314 = vmatprep.mubr.bf16.mxu1 %v1632_v8  ;;  %v1454_v27 = vmax.f32 %v1110_v11, 0.0  ;;  %v1456_v28 = vmax.f32 %v1303_v14, 0.0 }
 0x1c2   : > { %v1113_v19 = vpop.f32.mrf.mxu0  ;;  %v1306_v20 = vpop.f32.mrf.mxu1  ;;  %2122 = vmatmul.mubr.bf16.gmra.mxu0 %v1629_v9  ;;  %2315 = vmatmul.mubr.bf16.gmra.mxu1 %v1631_v10 }
 0x1c3   : > { %v1114_v21 = vadd.f32 %v1113_v19, %v4284_v42  ;;  %v1307_v22 = vadd.f32 %v1306_v20, %v4286_v43  ;;  %v1457_v23 = vmax.f32 %v1112_v15, 0.0  ;;  %v1459_v24 = vmax.f32 %v1305_v16, 0.0 }
 0x1c4   : > { %v1117_v25 = vpop.f32.mrf.mxu0  ;;  %v1310_v26 = vpop.f32.mrf.mxu1 }
 0x1c5   : > { %v1458_v29 = vmax.f32 %v1114_v21, 0.0  ;;  %v1460_v30 = vmax.f32 %v1307_v22, 0.0  ;;  %v1633_v40 = vpack.c.bf16 %v1457_v23, %v1453_v31  ;;  %v1635_v41 = vpack.c.bf16 %v1459_v24, %v1455_v32 }
 0x1c6   : > { %v1119_v33 = vpop.f32.mrf.mxu0  ;;  %v1312_v36 = vpop.f32.mrf.mxu1  ;;  %v1118_v52 = vadd.f32 %v1117_v25, %v4290_v44  ;;  %v1311_v53 = vadd.f32 %v1310_v26, %v4292_v45 }
 0x1c7   : > { %v1634_v38 = vpack.c.bf16 %v1458_v29, %v1454_v27  ;;  %v1636_v39 = vpack.c.bf16 %v1460_v30, %v1456_v28  ;;  %v1120_v46 = vadd.f32 %v1119_v33, %v4284_v42  ;;  %v1313_v49 = vadd.f32 %v1312_v36, %v4286_v43 }
 0x1c8   : > { %v1121_v47 = vpop.f32.mrf.mxu0  ;;  %v1314_v48 = vpop.f32.mrf.mxu1  ;;  %v1461_v2 = vmax.f32 %v1118_v52, 0.0  ;;  %v1463_v3 = vmax.f32 %v1311_v53, 0.0 }
 0x1c9   : > { %v1122_v50 = vadd.f32 %v1121_v47, %v4290_v44  ;;  %v1315_v51 = vadd.f32 %v1314_v48, %v4292_v45  ;;  %2131 = vmatprep.mubr.bf16.mxu0 %v1634_v38  ;;  %2324 = vmatprep.mubr.bf16.mxu1 %v1636_v39  ;;  %v1462_v62 = vmax.f32 %v1120_v46, 0.0  ;;  %v1464_v63 = vmax.f32 %v1313_v49, 0.0 }
 0x1ca   : > { %v1123_v54 = vpop.f32.mrf.mxu0  ;;  %v1316_v55 = vpop.f32.mrf.mxu1  ;;  %2132 = vmatmul.mubr.bf16.gmra.mxu0 %v1633_v40  ;;  %2325 = vmatmul.mubr.bf16.gmra.mxu1 %v1635_v41 }
 0x1cb   : > { %v1124_v56 = vadd.f32 %v1123_v54, %v4284_v42  ;;  %v1317_v57 = vadd.f32 %v1316_v55, %v4286_v43  ;;  %v1465_v58 = vmax.f32 %v1122_v50, 0.0  ;;  %v1467_v59 = vmax.f32 %v1315_v51, 0.0 }
 0x1cc   : > { %v1127_v60 = vpop.f32.mrf.mxu0  ;;  %v1320_v61 = vpop.f32.mrf.mxu1 }
 0x1cd   : > { %v1466_v0 = vmax.f32 %v1124_v56, 0.0  ;;  %v1468_v1 = vmax.f32 %v1317_v57, 0.0  ;;  %v1637_v8 = vpack.c.bf16 %v1465_v58, %v1461_v2  ;;  %v1639_v9 = vpack.c.bf16 %v1467_v59, %v1463_v3 }
 0x1ce   : > { %v1129_v4 = vpop.f32.mrf.mxu0  ;;  %v1322_v5 = vpop.f32.mrf.mxu1  ;;  %v1128_v16 = vadd.f32 %v1127_v60, %v4290_v44  ;;  %v1321_v17 = vadd.f32 %v1320_v61, %v4292_v45 }
 0x1cf   : > { %v1638_v6 = vpack.c.bf16 %v1466_v0, %v1462_v62  ;;  %v1640_v7 = vpack.c.bf16 %v1468_v1, %v1464_v63  ;;  %v1130_v10 = vadd.f32 %v1129_v4, %v4284_v42  ;;  %v1323_v13 = vadd.f32 %v1322_v5, %v4286_v43 }
 0x1d0   : > { %v1131_v11 = vpop.f32.mrf.mxu0  ;;  %v1324_v12 = vpop.f32.mrf.mxu1  ;;  %v1469_v30 = vmax.f32 %v1128_v16, 0.0  ;;  %v1471_v31 = vmax.f32 %v1321_v17, 0.0 }
 0x1d1   : > { %v1132_v14 = vadd.f32 %v1131_v11, %v4290_v44  ;;  %v1325_v15 = vadd.f32 %v1324_v12, %v4292_v45  ;;  %2141 = vmatprep.mubr.bf16.mxu0 %v1638_v6  ;;  %2334 = vmatprep.mubr.bf16.mxu1 %v1640_v7  ;;  %v1470_v26 = vmax.f32 %v1130_v10, 0.0  ;;  %v1472_v27 = vmax.f32 %v1323_v13, 0.0 }
 0x1d2   : > { %v1133_v18 = vpop.f32.mrf.mxu0  ;;  %v1326_v19 = vpop.f32.mrf.mxu1  ;;  %2142 = vmatmul.mubr.bf16.gmra.mxu0 %v1637_v8  ;;  %2335 = vmatmul.mubr.bf16.gmra.mxu1 %v1639_v9 }
 0x1d3   : > { %v1134_v20 = vadd.f32 %v1133_v18, %v4284_v42  ;;  %v1327_v21 = vadd.f32 %v1326_v19, %v4286_v43  ;;  %v1473_v22 = vmax.f32 %v1132_v14, 0.0  ;;  %v1475_v23 = vmax.f32 %v1325_v15, 0.0 }
 0x1d4   : > { %v1137_v24 = vpop.f32.mrf.mxu0  ;;  %v1330_v25 = vpop.f32.mrf.mxu1 }
 0x1d5   : > { %v1474_v28 = vmax.f32 %v1134_v20, 0.0  ;;  %v1476_v29 = vmax.f32 %v1327_v21, 0.0  ;;  %v1641_v39 = vpack.c.bf16 %v1473_v22, %v1469_v30  ;;  %v1643_v40 = vpack.c.bf16 %v1475_v23, %v1471_v31 }
 0x1d6   : > { %v1139_v32 = vpop.f32.mrf.mxu0  ;;  %v1332_v33 = vpop.f32.mrf.mxu1  ;;  %v1138_v51 = vadd.f32 %v1137_v24, %v4290_v44  ;;  %v1331_v52 = vadd.f32 %v1330_v25, %v4292_v45 }
 0x1d7   : > { %v1642_v36 = vpack.c.bf16 %v1474_v28, %v1470_v26  ;;  %v1644_v38 = vpack.c.bf16 %v1476_v29, %v1472_v27  ;;  %v1140_v41 = vadd.f32 %v1139_v32, %v4284_v42  ;;  %v1333_v48 = vadd.f32 %v1332_v33, %v4286_v43 }
 0x1d8   : > { %v1141_v46 = vpop.f32.mrf.mxu0  ;;  %v1334_v47 = vpop.f32.mrf.mxu1  ;;  %v1477_v1 = vmax.f32 %v1138_v51, 0.0  ;;  %v1479_v2 = vmax.f32 %v1331_v52, 0.0 }
 0x1d9   : > { %v1142_v49 = vadd.f32 %v1141_v46, %v4290_v44  ;;  %v1335_v50 = vadd.f32 %v1334_v47, %v4292_v45  ;;  %2151 = vmatprep.mubr.bf16.mxu0 %v1642_v36  ;;  %2344 = vmatprep.mubr.bf16.mxu1 %v1644_v38  ;;  %v1478_v61 = vmax.f32 %v1140_v41, 0.0  ;;  %v1480_v62 = vmax.f32 %v1333_v48, 0.0 }
 0x1da   : > { %v1143_v53 = vpop.f32.mrf.mxu0  ;;  %v1336_v54 = vpop.f32.mrf.mxu1  ;;  %2152 = vmatmul.mubr.bf16.gmra.mxu0 %v1641_v39  ;;  %2345 = vmatmul.mubr.bf16.gmra.mxu1 %v1643_v40 }
 0x1db   : > { %v1144_v55 = vadd.f32 %v1143_v53, %v4284_v42  ;;  %v1337_v56 = vadd.f32 %v1336_v54, %v4286_v43  ;;  %v1481_v57 = vmax.f32 %v1142_v49, 0.0  ;;  %v1483_v58 = vmax.f32 %v1335_v50, 0.0 }
 0x1dc   : > { %v1147_v59 = vpop.f32.mrf.mxu0  ;;  %v1340_v60 = vpop.f32.mrf.mxu1 }
 0x1dd   : > { %v1482_v63 = vmax.f32 %v1144_v55, 0.0  ;;  %v1484_v0 = vmax.f32 %v1337_v56, 0.0  ;;  %v1645_v7 = vpack.c.bf16 %v1481_v57, %v1477_v1  ;;  %v1647_v8 = vpack.c.bf16 %v1483_v58, %v1479_v2 }
 0x1de   : > { %v1149_v3 = vpop.f32.mrf.mxu0  ;;  %v1342_v4 = vpop.f32.mrf.mxu1  ;;  %v1148_v15 = vadd.f32 %v1147_v59, %v4290_v44  ;;  %v1341_v16 = vadd.f32 %v1340_v60, %v4292_v45 }
 0x1df   : > { %v1646_v5 = vpack.c.bf16 %v1482_v63, %v1478_v61  ;;  %v1648_v6 = vpack.c.bf16 %v1484_v0, %v1480_v62  ;;  %v1150_v9 = vadd.f32 %v1149_v3, %v4284_v42  ;;  %v1343_v12 = vadd.f32 %v1342_v4, %v4286_v43 }
 0x1e0   : > { %v1151_v10 = vpop.f32.mrf.mxu0  ;;  %v1344_v11 = vpop.f32.mrf.mxu1  ;;  %v1485_v29 = vmax.f32 %v1148_v15, 0.0  ;;  %v1487_v30 = vmax.f32 %v1341_v16, 0.0 }
 0x1e1   : > { %v1152_v13 = vadd.f32 %v1151_v10, %v4290_v44  ;;  %v1345_v14 = vadd.f32 %v1344_v11, %v4292_v45  ;;  %2161 = vmatprep.mubr.bf16.mxu0 %v1646_v5  ;;  %2354 = vmatprep.mubr.bf16.mxu1 %v1648_v6  ;;  %v1486_v25 = vmax.f32 %v1150_v9, 0.0  ;;  %v1488_v26 = vmax.f32 %v1343_v12, 0.0 }
 0x1e2   : > { %v1153_v17 = vpop.f32.mrf.mxu0  ;;  %v1346_v18 = vpop.f32.mrf.mxu1  ;;  %2162 = vmatmul.mubr.bf16.gmra.mxu0 %v1645_v7  ;;  %2355 = vmatmul.mubr.bf16.gmra.mxu1 %v1647_v8 }
 0x1e3   : > { %v1154_v19 = vadd.f32 %v1153_v17, %v4284_v42  ;;  %v1347_v20 = vadd.f32 %v1346_v18, %v4286_v43  ;;  %v1489_v21 = vmax.f32 %v1152_v13, 0.0  ;;  %v1491_v22 = vmax.f32 %v1345_v14, 0.0 }
 0x1e4   : > { %v1157_v23 = vpop.f32.mrf.mxu0  ;;  %v1350_v24 = vpop.f32.mrf.mxu1 }
 0x1e5   : > { %v1490_v27 = vmax.f32 %v1154_v19, 0.0  ;;  %v1492_v28 = vmax.f32 %v1347_v20, 0.0  ;;  %v1649_v38 = vpack.c.bf16 %v1489_v21, %v1485_v29  ;;  %v1651_v39 = vpack.c.bf16 %v1491_v22, %v1487_v30 }
 0x1e6   : > { %v1159_v31 = vpop.f32.mrf.mxu0  ;;  %v1352_v32 = vpop.f32.mrf.mxu1  ;;  %v1158_v50 = vadd.f32 %v1157_v23, %v4290_v44  ;;  %v1351_v51 = vadd.f32 %v1350_v24, %v4292_v45 }
 0x1e7   : > { %v1650_v33 = vpack.c.bf16 %v1490_v27, %v1486_v25  ;;  %v1652_v36 = vpack.c.bf16 %v1492_v28, %v1488_v26  ;;  %v1160_v40 = vadd.f32 %v1159_v31, %v4284_v42  ;;  %v1353_v47 = vadd.f32 %v1352_v32, %v4286_v43 }
 0x1e8   : > { %v1161_v41 = vpop.f32.mrf.mxu0  ;;  %v1354_v46 = vpop.f32.mrf.mxu1  ;;  %v1493_v0 = vmax.f32 %v1158_v50, 0.0  ;;  %v1495_v1 = vmax.f32 %v1351_v51, 0.0 }
 0x1e9   : > { %v1162_v48 = vadd.f32 %v1161_v41, %v4290_v44  ;;  %v1355_v49 = vadd.f32 %v1354_v46, %v4292_v45  ;;  %2171 = vmatprep.mubr.bf16.mxu0 %v1650_v33  ;;  %2364 = vmatprep.mubr.bf16.mxu1 %v1652_v36  ;;  %v1494_v60 = vmax.f32 %v1160_v40, 0.0  ;;  %v1496_v61 = vmax.f32 %v1353_v47, 0.0 }
 0x1ea   : > { %v1163_v52 = vpop.f32.mrf.mxu0  ;;  %v1356_v53 = vpop.f32.mrf.mxu1  ;;  %2172 = vmatmul.mubr.bf16.gmra.mxu0 %v1649_v38  ;;  %2365 = vmatmul.mubr.bf16.gmra.mxu1 %v1651_v39 }
 0x1eb   : > { %v1164_v54 = vadd.f32 %v1163_v52, %v4284_v42  ;;  %v1357_v55 = vadd.f32 %v1356_v53, %v4286_v43  ;;  %v1497_v56 = vmax.f32 %v1162_v48, 0.0  ;;  %v1499_v57 = vmax.f32 %v1355_v49, 0.0 }
 0x1ec   : > { %v1167_v58 = vpop.f32.mrf.mxu0  ;;  %v1360_v59 = vpop.f32.mrf.mxu1 }
 0x1ed   : > { %v1498_v62 = vmax.f32 %v1164_v54, 0.0  ;;  %v1500_v63 = vmax.f32 %v1357_v55, 0.0  ;;  %v1653_v6 = vpack.c.bf16 %v1497_v56, %v1493_v0  ;;  %v1655_v7 = vpack.c.bf16 %v1499_v57, %v1495_v1 }
 0x1ee   : > { %v1169_v2 = vpop.f32.mrf.mxu0  ;;  %v1362_v3 = vpop.f32.mrf.mxu1  ;;  %v1168_v14 = vadd.f32 %v1167_v58, %v4290_v44  ;;  %v1361_v15 = vadd.f32 %v1360_v59, %v4292_v45 }
 0x1ef   : > { %v1654_v4 = vpack.c.bf16 %v1498_v62, %v1494_v60  ;;  %v1656_v5 = vpack.c.bf16 %v1500_v63, %v1496_v61  ;;  %v1170_v8 = vadd.f32 %v1169_v2, %v4284_v42  ;;  %v1363_v11 = vadd.f32 %v1362_v3, %v4286_v43 }
 0x1f0   : > { %v1171_v9 = vpop.f32.mrf.mxu0  ;;  %v1364_v10 = vpop.f32.mrf.mxu1  ;;  %v1501_v28 = vmax.f32 %v1168_v14, 0.0  ;;  %v1503_v29 = vmax.f32 %v1361_v15, 0.0 }
 0x1f1   : > { %v1172_v12 = vadd.f32 %v1171_v9, %v4290_v44  ;;  %v1365_v13 = vadd.f32 %v1364_v10, %v4292_v45  ;;  %2181 = vmatprep.mubr.bf16.mxu0 %v1654_v4  ;;  %2374 = vmatprep.mubr.bf16.mxu1 %v1656_v5  ;;  %v1502_v24 = vmax.f32 %v1170_v8, 0.0  ;;  %v1504_v25 = vmax.f32 %v1363_v11, 0.0 }
 0x1f2   : > { %v1173_v16 = vpop.f32.mrf.mxu0  ;;  %v1366_v17 = vpop.f32.mrf.mxu1  ;;  %2182 = vmatmul.mubr.bf16.gmra.mxu0 %v1653_v6  ;;  %2375 = vmatmul.mubr.bf16.gmra.mxu1 %v1655_v7 }
 0x1f3   : > { %v1174_v18 = vadd.f32 %v1173_v16, %v4284_v42  ;;  %v1367_v19 = vadd.f32 %v1366_v17, %v4286_v43  ;;  %v1505_v20 = vmax.f32 %v1172_v12, 0.0  ;;  %v1507_v21 = vmax.f32 %v1365_v13, 0.0 }
 0x1f4   : > { %v1177_v22 = vpop.f32.mrf.mxu0  ;;  %v1370_v23 = vpop.f32.mrf.mxu1 }
 0x1f5   : > { %v1506_v26 = vmax.f32 %v1174_v18, 0.0  ;;  %v1508_v27 = vmax.f32 %v1367_v19, 0.0  ;;  %v1657_v36 = vpack.c.bf16 %v1505_v20, %v1501_v28  ;;  %v1659_v38 = vpack.c.bf16 %v1507_v21, %v1503_v29 }
 0x1f6   : > { %v1179_v30 = vpop.f32.mrf.mxu0  ;;  %v1372_v31 = vpop.f32.mrf.mxu1  ;;  %v1178_v49 = vadd.f32 %v1177_v22, %v4290_v44  ;;  %v1371_v50 = vadd.f32 %v1370_v23, %v4292_v45 }
 0x1f7   : > { %v1658_v32 = vpack.c.bf16 %v1506_v26, %v1502_v24  ;;  %v1660_v33 = vpack.c.bf16 %v1508_v27, %v1504_v25  ;;  %v1180_v39 = vadd.f32 %v1179_v30, %v4284_v42  ;;  %v1373_v46 = vadd.f32 %v1372_v31, %v4286_v43 }
 0x1f8   : > { %v1181_v40 = vpop.f32.mrf.mxu0  ;;  %v1374_v41 = vpop.f32.mrf.mxu1  ;;  %v1509_v63 = vmax.f32 %v1178_v49, 0.0  ;;  %v1511_v0 = vmax.f32 %v1371_v50, 0.0 }
 0x1f9   : > { %v1182_v47 = vadd.f32 %v1181_v40, %v4290_v44  ;;  %v1375_v48 = vadd.f32 %v1374_v41, %v4292_v45  ;;  %2191 = vmatprep.mubr.bf16.mxu0 %v1658_v32  ;;  %2384 = vmatprep.mubr.bf16.mxu1 %v1660_v33  ;;  %v1510_v59 = vmax.f32 %v1180_v39, 0.0  ;;  %v1512_v60 = vmax.f32 %v1373_v46, 0.0 }
 0x1fa   : > { %v1183_v51 = vpop.f32.mrf.mxu0  ;;  %v1376_v52 = vpop.f32.mrf.mxu1  ;;  %2192 = vmatmul.mubr.bf16.gmra.mxu0 %v1657_v36  ;;  %2385 = vmatmul.mubr.bf16.gmra.mxu1 %v1659_v38 }
 0x1fb   : > { %v1184_v53 = vadd.f32 %v1183_v51, %v4284_v42  ;;  %v1377_v54 = vadd.f32 %v1376_v52, %v4286_v43  ;;  %v1513_v55 = vmax.f32 %v1182_v47, 0.0  ;;  %v1515_v56 = vmax.f32 %v1375_v48, 0.0 }
 0x1fc   : > { %v1187_v57 = vpop.f32.mrf.mxu0  ;;  %v1380_v58 = vpop.f32.mrf.mxu1 }
 0x1fd   : > { %v1514_v61 = vmax.f32 %v1184_v53, 0.0  ;;  %v1516_v62 = vmax.f32 %v1377_v54, 0.0  ;;  %v1661_v5 = vpack.c.bf16 %v1513_v55, %v1509_v63  ;;  %v1663_v6 = vpack.c.bf16 %v1515_v56, %v1511_v0 }
 0x1fe   : > { %v1189_v1 = vpop.f32.mrf.mxu0  ;;  %v1382_v2 = vpop.f32.mrf.mxu1  ;;  %v1188_v13 = vadd.f32 %v1187_v57, %v4290_v44  ;;  %v1381_v14 = vadd.f32 %v1380_v58, %v4292_v45 }
 0x1ff   : > { %v1662_v3 = vpack.c.bf16 %v1514_v61, %v1510_v59  ;;  %v1664_v4 = vpack.c.bf16 %v1516_v62, %v1512_v60  ;;  %v1190_v7 = vadd.f32 %v1189_v1, %v4284_v42  ;;  %v1383_v10 = vadd.f32 %v1382_v2, %v4286_v43 }
 0x200   : > { %v1191_v8 = vpop.f32.mrf.mxu0  ;;  %v1384_v9 = vpop.f32.mrf.mxu1  ;;  %v1517_v27 = vmax.f32 %v1188_v13, 0.0  ;;  %v1519_v28 = vmax.f32 %v1381_v14, 0.0 }
 0x201   : > { %v1192_v11 = vadd.f32 %v1191_v8, %v4290_v44  ;;  %v1385_v12 = vadd.f32 %v1384_v9, %v4292_v45  ;;  %2201 = vmatprep.mubr.bf16.mxu0 %v1662_v3  ;;  %2394 = vmatprep.mubr.bf16.mxu1 %v1664_v4  ;;  %v1518_v23 = vmax.f32 %v1190_v7, 0.0  ;;  %v1520_v24 = vmax.f32 %v1383_v10, 0.0 }
 0x202   : > { %v1193_v15 = vpop.f32.mrf.mxu0  ;;  %v1386_v16 = vpop.f32.mrf.mxu1  ;;  %2202 = vmatmul.mubr.bf16.gmra.mxu0 %v1661_v5  ;;  %2395 = vmatmul.mubr.bf16.gmra.mxu1 %v1663_v6 }
 0x203   : > { %v1194_v17 = vadd.f32 %v1193_v15, %v4284_v42  ;;  %v1387_v18 = vadd.f32 %v1386_v16, %v4286_v43  ;;  %v1521_v19 = vmax.f32 %v1192_v11, 0.0  ;;  %v1523_v20 = vmax.f32 %v1385_v12, 0.0 }
 0x204   : > { %v1197_v21 = vpop.f32.mrf.mxu0  ;;  %v1390_v22 = vpop.f32.mrf.mxu1 }
 0x205   : > { %v1522_v25 = vmax.f32 %v1194_v17, 0.0  ;;  %v1524_v26 = vmax.f32 %v1387_v18, 0.0  ;;  %v1665_v33 = vpack.c.bf16 %v1521_v19, %v1517_v27  ;;  %v1667_v36 = vpack.c.bf16 %v1523_v20, %v1519_v28 }
 0x206   : > { %v1199_v29 = vpop.f32.mrf.mxu0  ;;  %v1392_v30 = vpop.f32.mrf.mxu1  ;;  %v1198_v48 = vadd.f32 %v1197_v21, %v4290_v44  ;;  %v1391_v49 = vadd.f32 %v1390_v22, %v4292_v45 }
 0x207   : > { %v1666_v31 = vpack.c.bf16 %v1522_v25, %v1518_v23  ;;  %v1668_v32 = vpack.c.bf16 %v1524_v26, %v1520_v24  ;;  %v1200_v38 = vadd.f32 %v1199_v29, %v4284_v42  ;;  %v1393_v41 = vadd.f32 %v1392_v30, %v4286_v43 }
 0x208   : > { %v1201_v39 = vpop.f32.mrf.mxu0  ;;  %v1394_v40 = vpop.f32.mrf.mxu1  ;;  %v1525_v62 = vmax.f32 %v1198_v48, 0.0  ;;  %v1527_v63 = vmax.f32 %v1391_v49, 0.0 }
 0x209   : > { %v1202_v46 = vadd.f32 %v1201_v39, %v4290_v44  ;;  %v1395_v47 = vadd.f32 %v1394_v40, %v4292_v45  ;;  %2211 = vmatprep.mubr.bf16.mxu0 %v1666_v31  ;;  %2404 = vmatprep.mubr.bf16.mxu1 %v1668_v32  ;;  %v1526_v58 = vmax.f32 %v1200_v38, 0.0  ;;  %v1528_v59 = vmax.f32 %v1393_v41, 0.0 }
 0x20a   : > { %v1203_v50 = vpop.f32.mrf.mxu0  ;;  %v1396_v51 = vpop.f32.mrf.mxu1  ;;  %2212 = vmatmul.mubr.bf16.gmra.mxu0 %v1665_v33  ;;  %2405 = vmatmul.mubr.bf16.gmra.mxu1 %v1667_v36 }
 0x20b   : > { %v1204_v52 = vadd.f32 %v1203_v50, %v4284_v42  ;;  %v1397_v53 = vadd.f32 %v1396_v51, %v4286_v43  ;;  %v1529_v54 = vmax.f32 %v1202_v46, 0.0  ;;  %v1531_v55 = vmax.f32 %v1395_v47, 0.0 }
 0x20c   : > { %v1207_v56 = vpop.f32.mrf.mxu0  ;;  %v1400_v57 = vpop.f32.mrf.mxu1 }
 0x20d   : > { %v1530_v60 = vmax.f32 %v1204_v52, 0.0  ;;  %v1532_v61 = vmax.f32 %v1397_v53, 0.0  ;;  %v1669_v4 = vpack.c.bf16 %v1529_v54, %v1525_v62  ;;  %v1671_v5 = vpack.c.bf16 %v1531_v55, %v1527_v63 }
 0x20e   : > { %v1209_v0 = vpop.f32.mrf.mxu0  ;;  %v1402_v1 = vpop.f32.mrf.mxu1  ;;  %v1208_v12 = vadd.f32 %v1207_v56, %v4290_v44  ;;  %v1401_v13 = vadd.f32 %v1400_v57, %v4292_v45 }
 0x20f   : > { %v1670_v2 = vpack.c.bf16 %v1530_v60, %v1526_v58  ;;  %v1672_v3 = vpack.c.bf16 %v1532_v61, %v1528_v59  ;;  %v1210_v6 = vadd.f32 %v1209_v0, %v4284_v42  ;;  %v1403_v9 = vadd.f32 %v1402_v1, %v4286_v43 }
 0x210   : > { %v1211_v7 = vpop.f32.mrf.mxu0  ;;  %v1404_v8 = vpop.f32.mrf.mxu1  ;;  %v1533_v26 = vmax.f32 %v1208_v12, 0.0  ;;  %v1535_v27 = vmax.f32 %v1401_v13, 0.0 }
 0x211   : > { %v1212_v10 = vadd.f32 %v1211_v7, %v4290_v44  ;;  %v1405_v11 = vadd.f32 %v1404_v8, %v4292_v45  ;;  %2221 = vmatprep.mubr.bf16.mxu0 %v1670_v2  ;;  %2414 = vmatprep.mubr.bf16.mxu1 %v1672_v3  ;;  %v1534_v22 = vmax.f32 %v1210_v6, 0.0  ;;  %v1536_v23 = vmax.f32 %v1403_v9, 0.0 }
 0x212   : > { %v1213_v14 = vpop.f32.mrf.mxu0  ;;  %v1406_v15 = vpop.f32.mrf.mxu1  ;;  %2222 = vmatmul.mubr.bf16.gmra.mxu0 %v1669_v4  ;;  %2415 = vmatmul.mubr.bf16.gmra.mxu1 %v1671_v5 }
 0x213   : > { %v1214_v16 = vadd.f32 %v1213_v14, %v4284_v42  ;;  %v1407_v17 = vadd.f32 %v1406_v15, %v4286_v43  ;;  %v1537_v18 = vmax.f32 %v1212_v10, 0.0  ;;  %v1539_v19 = vmax.f32 %v1405_v11, 0.0 }
 0x214   : > { %v1217_v20 = vpop.f32.mrf.mxu0  ;;  %v1410_v21 = vpop.f32.mrf.mxu1 }
 0x215   : > { %v1538_v24 = vmax.f32 %v1214_v16, 0.0  ;;  %v1540_v25 = vmax.f32 %v1407_v17, 0.0  ;;  %v1673_v32 = vpack.c.bf16 %v1537_v18, %v1533_v26  ;;  %v1675_v33 = vpack.c.bf16 %v1539_v19, %v1535_v27 }
 0x216   : > { %v1219_v28 = vpop.f32.mrf.mxu0  ;;  %v1412_v29 = vpop.f32.mrf.mxu1  ;;  %v1218_v47 = vadd.f32 %v1217_v20, %v4290_v44  ;;  %v1411_v48 = vadd.f32 %v1410_v21, %v4292_v45 }
 0x217   : > { %v1674_v30 = vpack.c.bf16 %v1538_v24, %v1534_v22  ;;  %v1676_v31 = vpack.c.bf16 %v1540_v25, %v1536_v23  ;;  %v1220_v36 = vadd.f32 %v1219_v28, %v4284_v42  ;;  %v1413_v40 = vadd.f32 %v1412_v29, %v4286_v43 }
 0x218   : > { %v1221_v38 = vpop.f32.mrf.mxu0  ;;  %v1414_v39 = vpop.f32.mrf.mxu1  ;;  %v1541_v61 = vmax.f32 %v1218_v47, 0.0  ;;  %v1543_v62 = vmax.f32 %v1411_v48, 0.0  ;;  %v1560_v47 = vld [vmem:[#allocation2 + $0x18] sm:$0xff] }
 0x219   : > { %v1222_v41 = vadd.f32 %v1221_v38, %v4290_v44  ;;  %v1415_v46 = vadd.f32 %v1414_v39, %v4292_v45  ;;  %2231 = vmatprep.mubr.bf16.mxu0 %v1674_v30  ;;  %2424 = vmatprep.mubr.bf16.mxu1 %v1676_v31  ;;  %v1542_v57 = vmax.f32 %v1220_v36, 0.0  ;;  %v1544_v58 = vmax.f32 %v1413_v40, 0.0  ;;  %v1558_v30 = vld [vmem:[#allocation2 + $0x1b0] sm:$0xff]  ;;  %v1559_v38 = vld [vmem:[#allocation2 + $0xd8] sm:$0xff] }
 0x21a   : > { %v1223_v49 = vpop.f32.mrf.mxu0  ;;  %v1416_v50 = vpop.f32.mrf.mxu1  ;;  %2232 = vmatmul.mubr.bf16.gmra.mxu0 %v1673_v32  ;;  %2425 = vmatmul.mubr.bf16.gmra.mxu1 %v1675_v33 }
 0x21b   : > { %v1224_v51 = vadd.f32 %v1223_v49, %v4284_v42  ;;  %v1417_v52 = vadd.f32 %v1416_v50, %v4286_v43  ;;  %v1545_v53 = vmax.f32 %v1222_v41, 0.0  ;;  %v1547_v54 = vmax.f32 %v1415_v46, 0.0 }
 0x21c   : > { %v1227_v55 = vpop.f32.mrf.mxu0  ;;  %v1420_v56 = vpop.f32.mrf.mxu1 }
 0x21d   : > { %v1546_v59 = vmax.f32 %v1224_v51, 0.0  ;;  %v1548_v60 = vmax.f32 %v1417_v52, 0.0  ;;  %v1677_v3 = vpack.c.bf16 %v1545_v53, %v1541_v61  ;;  %v1679_v4 = vpack.c.bf16 %v1547_v54, %v1543_v62  ;;  %v1561_v52 = vld [vmem:[#allocation2 + $0x50] sm:$0xff] }
 0x21e   : > { %v1229_v63 = vpop.f32.mrf.mxu0  ;;  %v1422_v0 = vpop.f32.mrf.mxu1  ;;  %v1228_v11 = vadd.f32 %v1227_v55, %v4290_v44  ;;  %v1421_v12 = vadd.f32 %v1420_v56, %v4292_v45  ;;  %v1563_v62 = vld [vmem:[#allocation2 + $0x130] sm:$0xff] }
 0x21f   : > { %v1678_v1 = vpack.c.bf16 %v1546_v59, %v1542_v57  ;;  %v1680_v2 = vpack.c.bf16 %v1548_v60, %v1544_v58  ;;  %v1230_v5 = vadd.f32 %v1229_v63, %v4284_v42  ;;  %v1423_v8 = vadd.f32 %v1422_v0, %v4286_v43  ;;  %v1562_v57 = vld [vmem:[#allocation2 + $0x168] sm:$0xff] }
 0x220   : > { %v1231_v6 = vpop.f32.mrf.mxu0  ;;  %v1424_v7 = vpop.f32.mrf.mxu1  ;;  %v1549_v23 = vmax.f32 %v1228_v11, 0.0  ;;  %v1551_v24 = vmax.f32 %v1421_v12, 0.0 }
 0x221   : > { %v1232_v9 = vadd.f32 %v1231_v6, %v4290_v44  ;;  %v1425_v10 = vadd.f32 %v1424_v7, %v4292_v45  ;;  %2241 = vmatprep.mubr.bf16.mxu0 %v1678_v1  ;;  %2434 = vmatprep.mubr.bf16.mxu1 %v1680_v2  ;;  %v1550_v19 = vmax.f32 %v1230_v5, 0.0  ;;  %v1552_v20 = vmax.f32 %v1423_v8, 0.0  ;;  %v1565_v8 = vld [vmem:[#allocation2 + $0x180] sm:$0xff] }
 0x222   : > { %v1233_v13 = vpop.f32.mrf.mxu0  ;;  %v1426_v14 = vpop.f32.mrf.mxu1  ;;  %2242 = vmatmul.mubr.bf16.gmra.mxu0 %v1677_v3  ;;  %2435 = vmatmul.mubr.bf16.gmra.mxu1 %v1679_v4  ;;  %v1564_v3 = vld [vmem:[#allocation2 + $0x48] sm:$0xff] }
 0x223   : > { %v1234_v15 = vadd.f32 %v1233_v13, %v4284_v42  ;;  %v1427_v16 = vadd.f32 %v1426_v14, %v4286_v43  ;;  %v1553_v17 = vmax.f32 %v1232_v9, 0.0  ;;  %v1555_v18 = vmax.f32 %v1425_v10, 0.0  ;;  %v1557_v42 = vld [vmem:[#allocation2 + $0xb0] sm:$0xff] }
 0x224   : > { %v1566_v13 = vld [vmem:[#allocation2 + $0x110] sm:$0xff] }
 0x225   : > { %v1554_v21 = vmax.f32 %v1234_v15, 0.0  ;;  %v1556_v22 = vmax.f32 %v1427_v16, 0.0  ;;  %v1681_v26 = vpack.c.bf16 %v1553_v17, %v1549_v23  ;;  %v1683_v45 = vpack.c.bf16 %v1555_v18, %v1551_v24  ;;  %v1567_v18 = vld [vmem:[#allocation2 + $0x118] sm:$0xff] }
 0x226   : > { %v1568_v23 = vld [vmem:[#allocation2 + $0x98] sm:$0xff] }
 0x227   : > { %v1682_v25 = vpack.c.bf16 %v1554_v21, %v1550_v19  ;;  %v1684_v44 = vpack.c.bf16 %v1556_v22, %v1552_v20 }
 0x229   : > { %2251 = vmatprep.mubr.bf16.mxu0 %v1682_v25  ;;  %2444 = vmatprep.mubr.bf16.mxu1 %v1684_v44 }
 0x22a   : > { %2252 = vmatmul.mubr.bf16.gmra.mxu0 %v1681_v26  ;;  %2445 = vmatmul.mubr.bf16.gmra.mxu1 %v1683_v45  ;;  %v1569_v45 = vld [vmem:[#allocation2 + $0x120] sm:$0xff] }
 0x272   : > { %v2103_v27 = vpop.f32.mrf.mxu0  ;;  %v2296_v28 = vpop.f32.mrf.mxu1 }
 0x273   : > { %v2297_v43 = vadd.f32 %v2296_v28, %v2103_v27 }
 0x274   : > { %v2105_v29 = vpop.f32.mrf.mxu0  ;;  %v2298_v31 = vpop.f32.mrf.mxu1 }
 0x275   : > { %v2455_v32 = vadd.f32 %v2297_v43, %v1557_v42  ;;  %v2299_v33 = vadd.f32 %v2298_v31, %v2105_v29  ;;  %v1570_v29 = vld [vmem:[#allocation2 + $0x150] sm:$0xff] }
 0x276   : > { %v2107_v36 = vpop.f32.mrf.mxu0  ;;  %v2300_v39 = vpop.f32.mrf.mxu1 }
 0x277   : > { %2519 = vst [vmem:[#allocation2 + $0xb0] sm:$0xff] %v2455_v32  ;;  %v2456_v40 = vadd.f32 %v2299_v33, %v1558_v30  ;;  %v2301_v41 = vadd.f32 %v2300_v39, %v2107_v36  ;;  %v1571_v36 = vld [vmem:[#allocation2 + $0x108] sm:$0xff] }
 0x278   : > { %v2109_v46 = vpop.f32.mrf.mxu0  ;;  %v2302_v48 = vpop.f32.mrf.mxu1 }
 0x279   : > { %2520 = vst [vmem:[#allocation2 + $0x1b0] sm:$0xff] %v2456_v40  ;;  %v2457_v49 = vadd.f32 %v2301_v41, %v1559_v38  ;;  %v2303_v50 = vadd.f32 %v2302_v48, %v2109_v46  ;;  %v1572_v46 = vld [vmem:[#allocation2 + $0x60] sm:$0xff] }
 0x27a   : > { %v2113_v51 = vpop.f32.mrf.mxu0  ;;  %v2306_v53 = vpop.f32.mrf.mxu1 }
 0x27b   : > { %2521 = vst [vmem:[#allocation2 + $0xd8] sm:$0xff] %v2457_v49  ;;  %v2458_v54 = vadd.f32 %v2303_v50, %v1560_v47  ;;  %v2307_v55 = vadd.f32 %v2306_v53, %v2113_v51  ;;  %v1573_v51 = vld [vmem:[#allocation2 + $0xe0] sm:$0xff] }
 0x27c   : > { %v2115_v56 = vpop.f32.mrf.mxu0  ;;  %v2308_v58 = vpop.f32.mrf.mxu1 }
 0x27d   : > { %2522 = vst [vmem:[#allocation2 + $0x18] sm:$0xff] %v2458_v54  ;;  %v2459_v59 = vadd.f32 %v2307_v55, %v1561_v52  ;;  %v2309_v60 = vadd.f32 %v2308_v58, %v2115_v56  ;;  %v1574_v56 = vld [vmem:[#allocation2 + $0x188] sm:$0xff] }
 0x27e   : > { %v2117_v61 = vpop.f32.mrf.mxu0  ;;  %v2310_v63 = vpop.f32.mrf.mxu1 }
 0x27f   : > { %2523 = vst [vmem:[#allocation2 + $0x50] sm:$0xff] %v2459_v59  ;;  %v2460_v0 = vadd.f32 %v2309_v60, %v1562_v57  ;;  %v2311_v1 = vadd.f32 %v2310_v63, %v2117_v61  ;;  %v1575_v61 = vld [vmem:[#allocation2 + $0x138] sm:$0xff] }
 0x280   : > { %v2119_v2 = vpop.f32.mrf.mxu0  ;;  %v2312_v4 = vpop.f32.mrf.mxu1 }
 0x281   : > { %2524 = vst [vmem:[#allocation2 + $0x168] sm:$0xff] %v2460_v0  ;;  %v2461_v5 = vadd.f32 %v2311_v1, %v1563_v62  ;;  %v2313_v6 = vadd.f32 %v2312_v4, %v2119_v2  ;;  %v1576_v2 = vld [vmem:[#allocation2 + $0x140] sm:$0xff] }
 0x282   : > { %v2123_v7 = vpop.f32.mrf.mxu0  ;;  %v2316_v9 = vpop.f32.mrf.mxu1 }
 0x283   : > { %2525 = vst [vmem:[#allocation2 + $0x130] sm:$0xff] %v2461_v5  ;;  %v2462_v10 = vadd.f32 %v2313_v6, %v1564_v3  ;;  %v2317_v11 = vadd.f32 %v2316_v9, %v2123_v7  ;;  %v1577_v7 = vld [vmem:[#allocation2 + $0x80] sm:$0xff] }
 0x284   : > { %v2125_v12 = vpop.f32.mrf.mxu0  ;;  %v2318_v14 = vpop.f32.mrf.mxu1 }
 0x285   : > { %2526 = vst [vmem:[#allocation2 + $0x48] sm:$0xff] %v2462_v10  ;;  %v2463_v15 = vadd.f32 %v2317_v11, %v1565_v8  ;;  %v2319_v16 = vadd.f32 %v2318_v14, %v2125_v12  ;;  %v1578_v12 = vld [vmem:[#allocation2 + $0x1a8] sm:$0xff] }
 0x286   : > { %v2127_v17 = vpop.f32.mrf.mxu0  ;;  %v2320_v19 = vpop.f32.mrf.mxu1 }
 0x287   : > { %2527 = vst [vmem:[#allocation2 + $0x180] sm:$0xff] %v2463_v15  ;;  %v2464_v20 = vadd.f32 %v2319_v16, %v1566_v13  ;;  %v2321_v21 = vadd.f32 %v2320_v19, %v2127_v17  ;;  %v1579_v17 = vld [vmem:[#allocation2 + $0x1b8] sm:$0xff] }
 0x288   : > { %v2129_v22 = vpop.f32.mrf.mxu0  ;;  %v2322_v24 = vpop.f32.mrf.mxu1 }
 0x289   : > { %2528 = vst [vmem:[#allocation2 + $0x110] sm:$0xff] %v2464_v20  ;;  %v2465_v25 = vadd.f32 %v2321_v21, %v1567_v18  ;;  %v2323_v44 = vadd.f32 %v2322_v24, %v2129_v22  ;;  %v1580_v22 = vld [vmem:[#allocation2 + $0x28] sm:$0xff] }
 0x28a   : > { %v2133_v26 = vpop.f32.mrf.mxu0  ;;  %v2326_v27 = vpop.f32.mrf.mxu1 }
 0x28b   : > { %2529 = vst [vmem:[#allocation2 + $0x118] sm:$0xff] %v2465_v25  ;;  %v2466_v42 = vadd.f32 %v2323_v44, %v1568_v23  ;;  %v2327_v28 = vadd.f32 %v2326_v27, %v2133_v26  ;;  %v1581_v26 = vld [vmem:[#allocation2 + $0x1e8] sm:$0xff] }
 0x28c   : > { %v2135_v43 = vpop.f32.mrf.mxu0  ;;  %v2328_v30 = vpop.f32.mrf.mxu1 }
 0x28d   : > { %2530 = vst [vmem:[#allocation2 + $0x98] sm:$0xff] %v2466_v42  ;;  %v2467_v31 = vadd.f32 %v2327_v28, %v1569_v45  ;;  %v2329_v32 = vadd.f32 %v2328_v30, %v2135_v43  ;;  %v1582_v43 = vld [vmem:[#allocation2 + $0xf8] sm:$0xff] }
 0x28e   : > { %v2137_v33 = vpop.f32.mrf.mxu0  ;;  %v2330_v38 = vpop.f32.mrf.mxu1 }
 0x28f   : > { %2531 = vst [vmem:[#allocation2 + $0x120] sm:$0xff] %v2467_v31  ;;  %v2468_v39 = vadd.f32 %v2329_v32, %v1570_v29  ;;  %v2331_v40 = vadd.f32 %v2330_v38, %v2137_v33  ;;  %v1583_v33 = vld [vmem:[#allocation2 + $0x160] sm:$0xff] }
 0x290   : > { %v2139_v41 = vpop.f32.mrf.mxu0  ;;  %v2332_v47 = vpop.f32.mrf.mxu1 }
 0x291   : > { %2532 = vst [vmem:[#allocation2 + $0x150] sm:$0xff] %v2468_v39  ;;  %v2469_v48 = vadd.f32 %v2331_v40, %v1571_v36  ;;  %v2333_v49 = vadd.f32 %v2332_v47, %v2139_v41  ;;  %v1584_v41 = vld [vmem:[#allocation2 + $0x30] sm:$0xff] }
 0x292   : > { %v2143_v50 = vpop.f32.mrf.mxu0  ;;  %v2336_v52 = vpop.f32.mrf.mxu1 }
 0x293   : > { %2533 = vst [vmem:[#allocation2 + $0x108] sm:$0xff] %v2469_v48  ;;  %v2470_v53 = vadd.f32 %v2333_v49, %v1572_v46  ;;  %v2337_v54 = vadd.f32 %v2336_v52, %v2143_v50  ;;  %v1585_v50 = vld [vmem:[#allocation2 + $0x1e0] sm:$0xff] }
 0x294   : > { %v2145_v55 = vpop.f32.mrf.mxu0  ;;  %v2338_v57 = vpop.f32.mrf.mxu1 }
 0x295   : > { %2534 = vst [vmem:[#allocation2 + $0x60] sm:$0xff] %v2470_v53  ;;  %v2471_v58 = vadd.f32 %v2337_v54, %v1573_v51  ;;  %v2339_v59 = vadd.f32 %v2338_v57, %v2145_v55  ;;  %v1586_v55 = vld [vmem:[#allocation2] sm:$0xff] }
 0x296   : > { %v2147_v60 = vpop.f32.mrf.mxu0  ;;  %v2340_v62 = vpop.f32.mrf.mxu1 }
 0x297   : > { %2535 = vst [vmem:[#allocation2 + $0xe0] sm:$0xff] %v2471_v58  ;;  %v2472_v63 = vadd.f32 %v2339_v59, %v1574_v56  ;;  %v2341_v0 = vadd.f32 %v2340_v62, %v2147_v60  ;;  %v1587_v60 = vld [vmem:[#allocation2 + $0xf0] sm:$0xff] }
 0x298   : > { %v2149_v1 = vpop.f32.mrf.mxu0  ;;  %v2342_v3 = vpop.f32.mrf.mxu1 }
 0x299   : > { %2536 = vst [vmem:[#allocation2 + $0x188] sm:$0xff] %v2472_v63  ;;  %v2473_v4 = vadd.f32 %v2341_v0, %v1575_v61  ;;  %v2343_v5 = vadd.f32 %v2342_v3, %v2149_v1  ;;  %v1588_v1 = vld [vmem:[#allocation2 + $0x8] sm:$0xff] }
 0x29a   : > { %v2153_v6 = vpop.f32.mrf.mxu0  ;;  %v2346_v8 = vpop.f32.mrf.mxu1 }
 0x29b   : > { %2537 = vst [vmem:[#allocation2 + $0x138] sm:$0xff] %v2473_v4  ;;  %v2474_v9 = vadd.f32 %v2343_v5, %v1576_v2  ;;  %v2347_v10 = vadd.f32 %v2346_v8, %v2153_v6  ;;  %v1589_v6 = vld [vmem:[#allocation2 + $0x148] sm:$0xff] }
 0x29c   : > { %v2155_v11 = vpop.f32.mrf.mxu0  ;;  %v2348_v13 = vpop.f32.mrf.mxu1 }
 0x29d   : > { %2538 = vst [vmem:[#allocation2 + $0x140] sm:$0xff] %v2474_v9  ;;  %v2475_v14 = vadd.f32 %v2347_v10, %v1577_v7  ;;  %v2349_v15 = vadd.f32 %v2348_v13, %v2155_v11  ;;  %v1590_v11 = vld [vmem:[#allocation2 + $0x1d0] sm:$0xff] }
 0x29e   : > { %v2157_v16 = vpop.f32.mrf.mxu0  ;;  %v2350_v18 = vpop.f32.mrf.mxu1 }
 0x29f   : > { %2539 = vst [vmem:[#allocation2 + $0x80] sm:$0xff] %v2475_v14  ;;  %v2476_v19 = vadd.f32 %v2349_v15, %v1578_v12  ;;  %v2351_v20 = vadd.f32 %v2350_v18, %v2157_v16  ;;  %v1591_v16 = vld [vmem:[#allocation2 + $0x100] sm:$0xff] }
 0x2a0   : > { %v2159_v21 = vpop.f32.mrf.mxu0  ;;  %v2352_v23 = vpop.f32.mrf.mxu1 }
 0x2a1   : > { %2540 = vst [vmem:[#allocation2 + $0x1a8] sm:$0xff] %v2476_v19  ;;  %v2477_v24 = vadd.f32 %v2351_v20, %v1579_v17  ;;  %v2353_v25 = vadd.f32 %v2352_v23, %v2159_v21  ;;  %v1592_v21 = vld [vmem:[#allocation2 + $0xc8] sm:$0xff] }
 0x2a2   : > { %v2163_v44 = vpop.f32.mrf.mxu0  ;;  %v2356_v45 = vpop.f32.mrf.mxu1 }
 0x2a3   : > { %2541 = vst [vmem:[#allocation2 + $0x1b8] sm:$0xff] %v2477_v24  ;;  %v2478_v27 = vadd.f32 %v2353_v25, %v1580_v22  ;;  %v2357_v42 = vadd.f32 %v2356_v45, %v2163_v44  ;;  %v1593_v44 = vld [vmem:[#allocation2 + $0x40] sm:$0xff] }
 0x2a4   : > { %v2165_v28 = vpop.f32.mrf.mxu0  ;;  %v2358_v29 = vpop.f32.mrf.mxu1 }
 0x2a5   : > { %2542 = vst [vmem:[#allocation2 + $0x28] sm:$0xff] %v2478_v27  ;;  %v2479_v30 = vadd.f32 %v2357_v42, %v1581_v26  ;;  %v2359_v31 = vadd.f32 %v2358_v29, %v2165_v28  ;;  %v1594_v28 = vld [vmem:[#allocation2 + $0x1f8] sm:$0xff] }
 0x2a6   : > { %v2167_v32 = vpop.f32.mrf.mxu0  ;;  %v2360_v36 = vpop.f32.mrf.mxu1 }
 0x2a7   : > { %2543 = vst [vmem:[#allocation2 + $0x1e8] sm:$0xff] %v2479_v30  ;;  %v2480_v38 = vadd.f32 %v2359_v31, %v1582_v43  ;;  %v2361_v39 = vadd.f32 %v2360_v36, %v2167_v32  ;;  %v1595_v32 = vld [vmem:[#allocation2 + $0x20] sm:$0xff] }
 0x2a8   : > { %v2169_v40 = vpop.f32.mrf.mxu0  ;;  %v2362_v46 = vpop.f32.mrf.mxu1 }
 0x2a9   : > { %2544 = vst [vmem:[#allocation2 + $0xf8] sm:$0xff] %v2480_v38  ;;  %v2481_v47 = vadd.f32 %v2361_v39, %v1583_v33  ;;  %v2363_v48 = vadd.f32 %v2362_v46, %v2169_v40  ;;  %v1596_v40 = vld [vmem:[#allocation2 + $0x128] sm:$0xff] }
 0x2aa   : > { %v2173_v49 = vpop.f32.mrf.mxu0  ;;  %v2366_v51 = vpop.f32.mrf.mxu1 }
 0x2ab   : > { %2545 = vst [vmem:[#allocation2 + $0x160] sm:$0xff] %v2481_v47  ;;  %v2482_v52 = vadd.f32 %v2363_v48, %v1584_v41  ;;  %v2367_v53 = vadd.f32 %v2366_v51, %v2173_v49  ;;  %v1597_v49 = vld [vmem:[#allocation2 + $0x1a0] sm:$0xff] }
 0x2ac   : > { %v2175_v54 = vpop.f32.mrf.mxu0  ;;  %v2368_v56 = vpop.f32.mrf.mxu1 }
 0x2ad   : > { %2546 = vst [vmem:[#allocation2 + $0x30] sm:$0xff] %v2482_v52  ;;  %v2483_v57 = vadd.f32 %v2367_v53, %v1585_v50  ;;  %v2369_v58 = vadd.f32 %v2368_v56, %v2175_v54  ;;  %v1598_v54 = vld [vmem:[#allocation2 + $0x1f0] sm:$0xff] }
 0x2ae   : > { %v2177_v59 = vpop.f32.mrf.mxu0  ;;  %v2370_v61 = vpop.f32.mrf.mxu1 }
 0x2af   : > { %2547 = vst [vmem:[#allocation2 + $0x1e0] sm:$0xff] %v2483_v57  ;;  %v2484_v62 = vadd.f32 %v2369_v58, %v1586_v55  ;;  %v2371_v63 = vadd.f32 %v2370_v61, %v2177_v59  ;;  %v1599_v59 = vld [vmem:[#allocation2 + $0xe8] sm:$0xff] }
 0x2b0   : > { %v2179_v0 = vpop.f32.mrf.mxu0  ;;  %v2372_v2 = vpop.f32.mrf.mxu1 }
 0x2b1   : > { %2548 = vst [vmem:[#allocation2] sm:$0xff] %v2484_v62  ;;  %v2485_v3 = vadd.f32 %v2371_v63, %v1587_v60  ;;  %v2373_v4 = vadd.f32 %v2372_v2, %v2179_v0  ;;  %v1600_v0 = vld [vmem:[#allocation2 + $0x78] sm:$0xff] }
 0x2b2   : > { %v2183_v5 = vpop.f32.mrf.mxu0  ;;  %v2376_v7 = vpop.f32.mrf.mxu1 }
 0x2b3   : > { %2549 = vst [vmem:[#allocation2 + $0xf0] sm:$0xff] %v2485_v3  ;;  %v2486_v8 = vadd.f32 %v2373_v4, %v1588_v1  ;;  %v2377_v9 = vadd.f32 %v2376_v7, %v2183_v5  ;;  %v1601_v5 = vld [vmem:[#allocation2 + $0x70] sm:$0xff] }
 0x2b4   : > { %v2185_v10 = vpop.f32.mrf.mxu0  ;;  %v2378_v12 = vpop.f32.mrf.mxu1 }
 0x2b5   : > { %2550 = vst [vmem:[#allocation2 + $0x8] sm:$0xff] %v2486_v8  ;;  %v2487_v13 = vadd.f32 %v2377_v9, %v1589_v6  ;;  %v2379_v14 = vadd.f32 %v2378_v12, %v2185_v10  ;;  %v1602_v10 = vld [vmem:[#allocation2 + $0x90] sm:$0xff] }
 0x2b6   : > { %v2187_v15 = vpop.f32.mrf.mxu0  ;;  %v2380_v17 = vpop.f32.mrf.mxu1 }
 0x2b7   : > { %2551 = vst [vmem:[#allocation2 + $0x148] sm:$0xff] %v2487_v13  ;;  %v2488_v18 = vadd.f32 %v2379_v14, %v1590_v11  ;;  %v2381_v19 = vadd.f32 %v2380_v17, %v2187_v15  ;;  %v1603_v15 = vld [vmem:[#allocation2 + $0x1d8] sm:$0xff] }
 0x2b8   : > { %v2189_v20 = vpop.f32.mrf.mxu0  ;;  %v2382_v22 = vpop.f32.mrf.mxu1 }
 0x2b9   : > { %2552 = vst [vmem:[#allocation2 + $0x1d0] sm:$0xff] %v2488_v18  ;;  %v2489_v23 = vadd.f32 %v2381_v19, %v1591_v16  ;;  %v2383_v24 = vadd.f32 %v2382_v22, %v2189_v20  ;;  %v1604_v20 = vld [vmem:[#allocation2 + $0xd0] sm:$0xff] }
 0x2ba   : > { %v2193_v25 = vpop.f32.mrf.mxu0  ;;  %v2386_v26 = vpop.f32.mrf.mxu1 }
 0x2bb   : > { %2553 = vst [vmem:[#allocation2 + $0x100] sm:$0xff] %v2489_v23  ;;  %v2490_v45 = vadd.f32 %v2383_v24, %v1592_v21  ;;  %v2387_v27 = vadd.f32 %v2386_v26, %v2193_v25  ;;  %v1605_v25 = vld [vmem:[#allocation2 + $0xb8] sm:$0xff] }
 0x2bc   : > { %v2195_v42 = vpop.f32.mrf.mxu0  ;;  %v2388_v43 = vpop.f32.mrf.mxu1 }
 0x2bd   : > { %2554 = vst [vmem:[#allocation2 + $0xc8] sm:$0xff] %v2490_v45  ;;  %v2491_v29 = vadd.f32 %v2387_v27, %v1593_v44  ;;  %v2389_v30 = vadd.f32 %v2388_v43, %v2195_v42  ;;  %v1606_v42 = vld [vmem:[#allocation2 + $0x88] sm:$0xff] }
 0x2be   : > { %v2197_v31 = vpop.f32.mrf.mxu0  ;;  %v2390_v33 = vpop.f32.mrf.mxu1 }
 0x2bf   : > { %2555 = vst [vmem:[#allocation2 + $0x40] sm:$0xff] %v2491_v29  ;;  %v2492_v36 = vadd.f32 %v2389_v30, %v1594_v28  ;;  %v2391_v38 = vadd.f32 %v2390_v33, %v2197_v31  ;;  %v1607_v31 = vld [vmem:[#allocation2 + $0xa8] sm:$0xff] }
 0x2c0   : > { %v2199_v39 = vpop.f32.mrf.mxu0  ;;  %v2392_v41 = vpop.f32.mrf.mxu1 }
 0x2c1   : > { %2556 = vst [vmem:[#allocation2 + $0x1f8] sm:$0xff] %v2492_v36  ;;  %v2493_v46 = vadd.f32 %v2391_v38, %v1595_v32  ;;  %v2393_v47 = vadd.f32 %v2392_v41, %v2199_v39  ;;  %v1608_v39 = vld [vmem:[#allocation2 + $0x1c8] sm:$0xff] }
 0x2c2   : > { %v2203_v48 = vpop.f32.mrf.mxu0  ;;  %v2396_v50 = vpop.f32.mrf.mxu1 }
 0x2c3   : > { %2557 = vst [vmem:[#allocation2 + $0x20] sm:$0xff] %v2493_v46  ;;  %v2494_v51 = vadd.f32 %v2393_v47, %v1596_v40  ;;  %v2397_v52 = vadd.f32 %v2396_v50, %v2203_v48  ;;  %v1609_v48 = vld [vmem:[#allocation2 + $0x170] sm:$0xff] }
 0x2c4   : > { %v2205_v53 = vpop.f32.mrf.mxu0  ;;  %v2398_v55 = vpop.f32.mrf.mxu1 }
 0x2c5   : > { %2558 = vst [vmem:[#allocation2 + $0x128] sm:$0xff] %v2494_v51  ;;  %v2495_v56 = vadd.f32 %v2397_v52, %v1597_v49  ;;  %v2399_v57 = vadd.f32 %v2398_v55, %v2205_v53  ;;  %v1610_v53 = vld [vmem:[#allocation2 + $0x178] sm:$0xff] }
 0x2c6   : > { %v2207_v58 = vpop.f32.mrf.mxu0  ;;  %v2400_v60 = vpop.f32.mrf.mxu1 }
 0x2c7   : > { %2559 = vst [vmem:[#allocation2 + $0x1a0] sm:$0xff] %v2495_v56  ;;  %v2496_v61 = vadd.f32 %v2399_v57, %v1598_v54  ;;  %v2401_v62 = vadd.f32 %v2400_v60, %v2207_v58  ;;  %v1611_v58 = vld [vmem:[#allocation2 + $0x68] sm:$0xff] }
 0x2c8   : > { %v2209_v63 = vpop.f32.mrf.mxu0  ;;  %v2402_v1 = vpop.f32.mrf.mxu1 }
 0x2c9   : > { %2560 = vst [vmem:[#allocation2 + $0x1f0] sm:$0xff] %v2496_v61  ;;  %v2497_v2 = vadd.f32 %v2401_v62, %v1599_v59  ;;  %v2403_v3 = vadd.f32 %v2402_v1, %v2209_v63  ;;  %v1612_v63 = vld [vmem:[#allocation2 + $0x190] sm:$0xff] }
 0x2ca   : > { %v2213_v4 = vpop.f32.mrf.mxu0  ;;  %v2406_v6 = vpop.f32.mrf.mxu1 }
 0x2cb   : > { %2561 = vst [vmem:[#allocation2 + $0xe8] sm:$0xff] %v2497_v2  ;;  %v2498_v7 = vadd.f32 %v2403_v3, %v1600_v0  ;;  %v2407_v8 = vadd.f32 %v2406_v6, %v2213_v4  ;;  %v1613_v4 = vld [vmem:[#allocation2 + $0x198] sm:$0xff] }
 0x2cc   : > { %v2215_v9 = vpop.f32.mrf.mxu0  ;;  %v2408_v11 = vpop.f32.mrf.mxu1 }
 0x2cd   : > { %2562 = vst [vmem:[#allocation2 + $0x78] sm:$0xff] %v2498_v7  ;;  %v2499_v12 = vadd.f32 %v2407_v8, %v1601_v5  ;;  %v2409_v13 = vadd.f32 %v2408_v11, %v2215_v9  ;;  %v1614_v9 = vld [vmem:[#allocation2 + $0x38] sm:$0xff] }
 0x2ce   : > { %v2217_v14 = vpop.f32.mrf.mxu0  ;;  %v2410_v16 = vpop.f32.mrf.mxu1 }
 0x2cf   : > { %2563 = vst [vmem:[#allocation2 + $0x70] sm:$0xff] %v2499_v12  ;;  %v2500_v17 = vadd.f32 %v2409_v13, %v1602_v10  ;;  %v2411_v18 = vadd.f32 %v2410_v16, %v2217_v14  ;;  %v1615_v14 = vld [vmem:[#allocation2 + $0xc0] sm:$0xff] }
 0x2d0   : > { %v2219_v19 = vpop.f32.mrf.mxu0  ;;  %v2412_v21 = vpop.f32.mrf.mxu1 }
 0x2d1   : > { %2564 = vst [vmem:[#allocation2 + $0x90] sm:$0xff] %v2500_v17  ;;  %v2501_v22 = vadd.f32 %v2411_v18, %v1603_v15  ;;  %v2413_v23 = vadd.f32 %v2412_v21, %v2219_v19  ;;  %v1616_v19 = vld [vmem:[#allocation2 + $0x1c0] sm:$0xff] }
 0x2d2   : > { %v2223_v24 = vpop.f32.mrf.mxu0  ;;  %v2416_v44 = vpop.f32.mrf.mxu1 }
 0x2d3   : > { %2565 = vst [vmem:[#allocation2 + $0x1d8] sm:$0xff] %v2501_v22  ;;  %v2502_v26 = vadd.f32 %v2413_v23, %v1604_v20  ;;  %v2417_v45 = vadd.f32 %v2416_v44, %v2223_v24  ;;  %v1617_v24 = vld [vmem:[#allocation2 + $0x158] sm:$0xff] }
 0x2d4   : > { %v2225_v27 = vpop.f32.mrf.mxu0  ;;  %v2418_v28 = vpop.f32.mrf.mxu1 }
 0x2d5   : > { %2566 = vst [vmem:[#allocation2 + $0xd0] sm:$0xff] %v2502_v26  ;;  %v2503_v43 = vadd.f32 %v2417_v45, %v1605_v25  ;;  %v2419_v29 = vadd.f32 %v2418_v28, %v2225_v27  ;;  %v1618_v27 = vld [vmem:[#allocation2 + $0x10] sm:$0xff] }
 0x2d6   : > { %v2227_v30 = vpop.f32.mrf.mxu0  ;;  %v2420_v32 = vpop.f32.mrf.mxu1 }
 0x2d7   : > { %2567 = vst [vmem:[#allocation2 + $0xb8] sm:$0xff] %v2503_v43  ;;  %v2504_v33 = vadd.f32 %v2419_v29, %v1606_v42  ;;  %v2421_v36 = vadd.f32 %v2420_v32, %v2227_v30  ;;  %v1619_v30 = vld [vmem:[#allocation2 + $0x58] sm:$0xff] }
 0x2d8   : > { %v2229_v38 = vpop.f32.mrf.mxu0  ;;  %v2422_v40 = vpop.f32.mrf.mxu1 }
 0x2d9   : > { %2568 = vst [vmem:[#allocation2 + $0x88] sm:$0xff] %v2504_v33  ;;  %v2505_v41 = vadd.f32 %v2421_v36, %v1607_v31  ;;  %v2423_v46 = vadd.f32 %v2422_v40, %v2229_v38  ;;  %v1620_v38 = vld [vmem:[#allocation2 + $0xa0] sm:$0xff] }
 0x2da   : > { %v2233_v47 = vpop.f32.mrf.mxu0  ;;  %v2426_v49 = vpop.f32.mrf.mxu1 }
 0x2db   : > { %2569 = vst [vmem:[#allocation2 + $0xa8] sm:$0xff] %v2505_v41  ;;  %v2506_v50 = vadd.f32 %v2423_v46, %v1608_v39  ;;  %v2427_v51 = vadd.f32 %v2426_v49, %v2233_v47 }
 0x2dc   : > { %v2235_v52 = vpop.f32.mrf.mxu0  ;;  %v2428_v54 = vpop.f32.mrf.mxu1 }
 0x2dd   : > { %2570 = vst [vmem:[#allocation2 + $0x1c8] sm:$0xff] %v2506_v50  ;;  %v2507_v55 = vadd.f32 %v2427_v51, %v1609_v48  ;;  %v2429_v56 = vadd.f32 %v2428_v54, %v2235_v52 }
 0x2de   : > { %v2237_v57 = vpop.f32.mrf.mxu0  ;;  %v2430_v59 = vpop.f32.mrf.mxu1 }
 0x2df   : > { %2571 = vst [vmem:[#allocation2 + $0x170] sm:$0xff] %v2507_v55  ;;  %v2508_v60 = vadd.f32 %v2429_v56, %v1610_v53  ;;  %v2431_v61 = vadd.f32 %v2430_v59, %v2237_v57 }
 0x2e0   : > { %v2239_v62 = vpop.f32.mrf.mxu0  ;;  %v2432_v0 = vpop.f32.mrf.mxu1 }
 0x2e1   : > { %2572 = vst [vmem:[#allocation2 + $0x178] sm:$0xff] %v2508_v60  ;;  %v2509_v1 = vadd.f32 %v2431_v61, %v1611_v58  ;;  %v2433_v2 = vadd.f32 %v2432_v0, %v2239_v62 }
 0x2e2   : > { %v2243_v3 = vpop.f32.mrf.mxu0  ;;  %v2436_v5 = vpop.f32.mrf.mxu1 }
 0x2e3   : > { %2573 = vst [vmem:[#allocation2 + $0x68] sm:$0xff] %v2509_v1  ;;  %v2510_v6 = vadd.f32 %v2433_v2, %v1612_v63  ;;  %v2437_v7 = vadd.f32 %v2436_v5, %v2243_v3 }
 0x2e4   : > { %v2245_v8 = vpop.f32.mrf.mxu0  ;;  %v2438_v10 = vpop.f32.mrf.mxu1 }
 0x2e5   : > { %2574 = vst [vmem:[#allocation2 + $0x190] sm:$0xff] %v2510_v6  ;;  %v2511_v11 = vadd.f32 %v2437_v7, %v1613_v4  ;;  %v2439_v12 = vadd.f32 %v2438_v10, %v2245_v8 }
 0x2e6   : > { %v2247_v13 = vpop.f32.mrf.mxu0  ;;  %v2440_v15 = vpop.f32.mrf.mxu1 }
 0x2e7   : > { %2575 = vst [vmem:[#allocation2 + $0x198] sm:$0xff] %v2511_v11  ;;  %v2512_v16 = vadd.f32 %v2439_v12, %v1614_v9  ;;  %v2441_v17 = vadd.f32 %v2440_v15, %v2247_v13 }
 0x2e8   : > { %v2249_v18 = vpop.f32.mrf.mxu0  ;;  %v2442_v20 = vpop.f32.mrf.mxu1 }
 0x2e9   : > { %2576 = vst [vmem:[#allocation2 + $0x38] sm:$0xff] %v2512_v16  ;;  %v2513_v21 = vadd.f32 %v2441_v17, %v1615_v14  ;;  %v2443_v22 = vadd.f32 %v2442_v20, %v2249_v18 }
 0x2ea   : > { %v2253_v23 = vpop.f32.mrf.mxu0  ;;  %v2446_v25 = vpop.f32.mrf.mxu1 }
 0x2eb   : > { %2577 = vst [vmem:[#allocation2 + $0xc0] sm:$0xff] %v2513_v21  ;;  %v2514_v44 = vadd.f32 %v2443_v22, %v1616_v19  ;;  %v2447_v26 = vadd.f32 %v2446_v25, %v2253_v23 }
 0x2ec   : > { %v2255_v45 = vpop.f32.mrf.mxu0  ;;  %v2448_v42 = vpop.f32.mrf.mxu1 }
 0x2ed   : > { %2578 = vst [vmem:[#allocation2 + $0x1c0] sm:$0xff] %v2514_v44  ;;  %v2515_v28 = vadd.f32 %v2447_v26, %v1617_v24  ;;  %v2449_v43 = vadd.f32 %v2448_v42, %v2255_v45 }
 0x2ee   : > { %v2257_v29 = vpop.f32.mrf.mxu0  ;;  %v2450_v31 = vpop.f32.mrf.mxu1 }
 0x2ef   : > { %2579 = vst [vmem:[#allocation2 + $0x158] sm:$0xff] %v2515_v28  ;;  %v2516_v32 = vadd.f32 %v2449_v43, %v1618_v27  ;;  %v2451_v33 = vadd.f32 %v2450_v31, %v2257_v29 }
 0x2f0   : > { %v2259_v36 = vpop.f32.mrf.mxu0  ;;  %v2452_v39 = vpop.f32.mrf.mxu1 }
 0x2f1   : > { %2580 = vst [vmem:[#allocation2 + $0x10] sm:$0xff] %v2516_v32  ;;  %v2517_v40 = vadd.f32 %v2451_v33, %v1619_v30  ;;  %v2453_v41 = vadd.f32 %v2452_v39, %v2259_v36  ;;  %2586 = sbr.rel (%p3141_p8) target bundleno = 795 (0x31b), region = 64 }
 0x2f3   : > { %2581 = vst [vmem:[#allocation2 + $0x58] sm:$0xff] %v2517_v40  ;;  %v2518_v46 = vadd.f32 %v2453_v41, %v1620_v38 }
 0x2f5   : > { %2582 = vst [vmem:[#allocation2 + $0xa0] sm:$0xff] %v2518_v46 }
 0x2f6   : > { %v2587_v47 = vld [vmem:[#allocation2 + $0xb0] sm:$0xff]  ;;  %v2651_v48 = vld [vmem:[%s4677_s8] sm:$0x3]  ;;  %v2589_v52 = vld [vmem:[#allocation2 + $0xd8] sm:$0xff] }
 0x2f7   : > { %v2588_v49 = vld [vmem:[#allocation2 + $0x1b0] sm:$0xff]  ;;  %v4428_v50 = vrot.slane %v2651_v48, %v545_v37  ;;  %v4432_v51 = vrot.slane %v2651_v48, %v549_v35  ;;  %v2590_v53 = vld [vmem:[#allocation2 + $0x18] sm:$0xff]  ;;  %v2592_v55 = vld [vmem:[#allocation2 + $0x168] sm:$0xff] }
 0x2f8   : > { %v2591_v54 = vld [vmem:[#allocation2 + $0x50] sm:$0xff]  ;;  %v2594_v57 = vld [vmem:[#allocation2 + $0x48] sm:$0xff]  ;;  %v2595_v35 = vld [vmem:[#allocation2 + $0x180] sm:$0xff] }
 0x2f9   : > { %v2593_v56 = vld [vmem:[#allocation2 + $0x130] sm:$0xff]  ;;  %v2663_v58 = vadd.f32 %v4428_v50, %v2587_v47  ;;  %v2664_v59 = vadd.f32 %v4432_v51, %v2588_v49  ;;  %v2665_v37 = vadd.f32 %v4428_v50, %v2589_v52  ;;  %v2666_v34 = vadd.f32 %v4432_v51, %v2590_v53  ;;  %v2597_v61 = vld [vmem:[#allocation2 + $0x118] sm:$0xff]  ;;  %v2599_v3 = vld [vmem:[#allocation2 + $0x120] sm:$0xff] }
 0x2fa   : > { %v2596_v60 = vld [vmem:[#allocation2 + $0x110] sm:$0xff]  ;;  %v2667_v62 = vadd.f32 %v4428_v50, %v2591_v54  ;;  %v2668_v63 = vadd.f32 %v4432_v51, %v2592_v55  ;;  %v2669_v0 = vadd.f32 %v4428_v50, %v2593_v56  ;;  %v2670_v1 = vadd.f32 %v4432_v51, %v2594_v57  ;;  %v2598_v2 = vld [vmem:[#allocation2 + $0x98] sm:$0xff]  ;;  %v2601_v9 = vld [vmem:[#allocation2 + $0x108] sm:$0xff] }
 0x2fb   : > { %v2600_v4 = vld [vmem:[#allocation2 + $0x150] sm:$0xff]  ;;  %2727 = vst [vmem:[%s4048_s1] sm:$0xff] %v2663_v58  ;;  %2728 = vst [vmem:[%s4048_s1 + $0x8] sm:$0xff] %v2664_v59  ;;  %v2671_v5 = vadd.f32 %v4428_v50, %v2595_v35  ;;  %v2672_v6 = vadd.f32 %v4432_v51, %v2596_v60  ;;  %v2673_v7 = vadd.f32 %v4428_v50, %v2597_v61  ;;  %v2602_v10 = vld [vmem:[#allocation2 + $0x60] sm:$0xff] }
 0x2fc   : > { %2729 = vst [vmem:[%s4048_s1 + $0x10] sm:$0xff] %v2665_v37  ;;  %2730 = vst [vmem:[%s4048_s1 + $0x18] sm:$0xff] %v2666_v34  ;;  %v2674_v8 = vadd.f32 %v4432_v51, %v2598_v2  ;;  %v2603_v11 = vld [vmem:[#allocation2 + $0xe0] sm:$0xff]  ;;  %v2675_v12 = vadd.f32 %v4428_v50, %v2599_v3  ;;  %v2676_v13 = vadd.f32 %v4432_v51, %v2600_v4  ;;  %v2604_v16 = vld [vmem:[#allocation2 + $0x188] sm:$0xff] }
 0x2fd   : > { %2731 = vst [vmem:[%s4048_s1 + $0x20] sm:$0xff] %v2667_v62  ;;  %2732 = vst [vmem:[%s4048_s1 + $0x28] sm:$0xff] %v2668_v63  ;;  %v2677_v14 = vadd.f32 %v4428_v50, %v2601_v9  ;;  %v2678_v15 = vadd.f32 %v4432_v51, %v2602_v10  ;;  %v2605_v17 = vld [vmem:[#allocation2 + $0x138] sm:$0xff]  ;;  %v2606_v18 = vld [vmem:[#allocation2 + $0x140] sm:$0xff]  ;;  %v2679_v19 = vadd.f32 %v4428_v50, %v2603_v11 }
 0x2fe   : > { %2733 = vst [vmem:[%s4048_s1 + $0x30] sm:$0xff] %v2669_v0  ;;  %2734 = vst [vmem:[%s4048_s1 + $0x38] sm:$0xff] %v2670_v1  ;;  %v2680_v20 = vadd.f32 %v4432_v51, %v2604_v16  ;;  %v2681_v21 = vadd.f32 %v4428_v50, %v2605_v17  ;;  %v2682_v22 = vadd.f32 %v4432_v51, %v2606_v18  ;;  %v2607_v23 = vld [vmem:[#allocation2 + $0x80] sm:$0xff]  ;;  %v2608_v24 = vld [vmem:[#allocation2 + $0x1a8] sm:$0xff] }
 0x2ff   : > { %2735 = vst [vmem:[%s4048_s1 + $0x40] sm:$0xff] %v2671_v5  ;;  %2736 = vst [vmem:[%s4048_s1 + $0x48] sm:$0xff] %v2672_v6  ;;  %v2609_v25 = vld [vmem:[#allocation2 + $0x1b8] sm:$0xff]  ;;  %v2683_v44 = vadd.f32 %v4428_v50, %v2607_v23  ;;  %v2684_v26 = vadd.f32 %v4432_v51, %v2608_v24  ;;  %v2610_v27 = vld [vmem:[#allocation2 + $0x28] sm:$0xff] }
 0x300   : > { %2737 = vst [vmem:[%s4048_s1 + $0x50] sm:$0xff] %v2673_v7  ;;  %2738 = vst [vmem:[%s4048_s1 + $0x58] sm:$0xff] %v2674_v8  ;;  %v2685_v45 = vadd.f32 %v4428_v50, %v2609_v25  ;;  %v2611_v42 = vld [vmem:[#allocation2 + $0x1e8] sm:$0xff]  ;;  %v2612_v28 = vld [vmem:[#allocation2 + $0xf8] sm:$0xff]  ;;  %v2686_v43 = vadd.f32 %v4432_v51, %v2610_v27 }
 0x301   : > { %2739 = vst [vmem:[%s4048_s1 + $0x60] sm:$0xff] %v2675_v12  ;;  %2740 = vst [vmem:[%s4048_s1 + $0x68] sm:$0xff] %v2676_v13  ;;  %v2687_v29 = vadd.f32 %v4428_v50, %v2611_v42  ;;  %v2688_v30 = vadd.f32 %v4432_v51, %v2612_v28  ;;  %v2613_v31 = vld [vmem:[#allocation2 + $0x160] sm:$0xff]  ;;  %v2614_v32 = vld [vmem:[#allocation2 + $0x30] sm:$0xff] }
 0x302   : > { %2741 = vst [vmem:[%s4048_s1 + $0x70] sm:$0xff] %v2677_v14  ;;  %2742 = vst [vmem:[%s4048_s1 + $0x78] sm:$0xff] %v2678_v15  ;;  %v2615_v33 = vld [vmem:[#allocation2 + $0x1e0] sm:$0xff]  ;;  %v2689_v36 = vadd.f32 %v4428_v50, %v2613_v31  ;;  %v2690_v38 = vadd.f32 %v4432_v51, %v2614_v32  ;;  %v2617_v41 = vld [vmem:[#allocation2 + $0xf0] sm:$0xff] }
 0x303   : > { %2743 = vst [vmem:[%s4048_s1 + $0x80] sm:$0xff] %v2679_v19  ;;  %2744 = vst [vmem:[%s4048_s1 + $0x88] sm:$0xff] %v2680_v20  ;;  %v2691_v39 = vadd.f32 %v4428_v50, %v2615_v33  ;;  %v2616_v40 = vld [vmem:[#allocation2] sm:$0xff]  ;;  %v2618_v46 = vld [vmem:[#allocation2 + $0x8] sm:$0xff]  ;;  %v2693_v48 = vadd.f32 %v4428_v50, %v2617_v41 }
 0x304   : > { %2745 = vst [vmem:[%s4048_s1 + $0x90] sm:$0xff] %v2681_v21  ;;  %2746 = vst [vmem:[%s4048_s1 + $0x98] sm:$0xff] %v2682_v22  ;;  %v2692_v47 = vadd.f32 %v4432_v51, %v2616_v40  ;;  %v2694_v49 = vadd.f32 %v4432_v51, %v2618_v46  ;;  %v2619_v52 = vld [vmem:[#allocation2 + $0x148] sm:$0xff]  ;;  %v2620_v53 = vld [vmem:[#allocation2 + $0x1d0] sm:$0xff] }
 0x305   : > { %2747 = vst [vmem:[%s4048_s1 + $0xa0] sm:$0xff] %v2683_v44  ;;  %2748 = vst [vmem:[%s4048_s1 + $0xa8] sm:$0xff] %v2684_v26  ;;  %v2621_v54 = vld [vmem:[#allocation2 + $0x100] sm:$0xff]  ;;  %v2695_v55 = vadd.f32 %v4428_v50, %v2619_v52  ;;  %v2696_v56 = vadd.f32 %v4432_v51, %v2620_v53  ;;  %v2622_v58 = vld [vmem:[#allocation2 + $0xc8] sm:$0xff] }
 0x306   : > { %2749 = vst [vmem:[%s4048_s1 + $0xb0] sm:$0xff] %v2685_v45  ;;  %2750 = vst [vmem:[%s4048_s1 + $0xb8] sm:$0xff] %v2686_v43  ;;  %v2697_v57 = vadd.f32 %v4428_v50, %v2621_v54  ;;  %v2623_v59 = vld [vmem:[#allocation2 + $0x40] sm:$0xff]  ;;  %v2624_v37 = vld [vmem:[#allocation2 + $0x1f8] sm:$0xff]  ;;  %v2698_v34 = vadd.f32 %v4432_v51, %v2622_v58 }
 0x307   : > { %2751 = vst [vmem:[%s4048_s1 + $0xc0] sm:$0xff] %v2687_v29  ;;  %2752 = vst [vmem:[%s4048_s1 + $0xc8] sm:$0xff] %v2688_v30  ;;  %v2699_v35 = vadd.f32 %v4428_v50, %v2623_v59  ;;  %v2700_v60 = vadd.f32 %v4432_v51, %v2624_v37  ;;  %v2625_v61 = vld [vmem:[#allocation2 + $0x20] sm:$0xff]  ;;  %v2626_v62 = vld [vmem:[#allocation2 + $0x128] sm:$0xff] }
 0x308   : > { %2753 = vst [vmem:[%s4048_s1 + $0xd0] sm:$0xff] %v2689_v36  ;;  %2754 = vst [vmem:[%s4048_s1 + $0xd8] sm:$0xff] %v2690_v38  ;;  %v2627_v63 = vld [vmem:[#allocation2 + $0x1a0] sm:$0xff]  ;;  %v2701_v0 = vadd.f32 %v4428_v50, %v2625_v61  ;;  %v2702_v1 = vadd.f32 %v4432_v51, %v2626_v62  ;;  %v2628_v3 = vld [vmem:[#allocation2 + $0x1f0] sm:$0xff] }
 0x309   : > { %2755 = vst [vmem:[%s4048_s1 + $0xe0] sm:$0xff] %v2691_v39  ;;  %2756 = vst [vmem:[%s4048_s1 + $0xe8] sm:$0xff] %v2692_v47  ;;  %v2703_v2 = vadd.f32 %v4428_v50, %v2627_v63  ;;  %v2629_v4 = vld [vmem:[#allocation2 + $0xe8] sm:$0xff]  ;;  %v2630_v5 = vld [vmem:[#allocation2 + $0x78] sm:$0xff]  ;;  %v2704_v6 = vadd.f32 %v4432_v51, %v2628_v3 }
 0x30a   : > { %2757 = vst [vmem:[%s4048_s1 + $0xf0] sm:$0xff] %v2693_v48  ;;  %2758 = vst [vmem:[%s4048_s1 + $0xf8] sm:$0xff] %v2694_v49  ;;  %v2705_v7 = vadd.f32 %v4428_v50, %v2629_v4  ;;  %v2706_v8 = vadd.f32 %v4432_v51, %v2630_v5  ;;  %v2631_v9 = vld [vmem:[#allocation2 + $0x70] sm:$0xff]  ;;  %v2633_v11 = vld [vmem:[#allocation2 + $0x1d8] sm:$0xff] }
 0x30b   : > { %2759 = vst [vmem:[%s4048_s1 + $0x100] sm:$0xff] %v2695_v55  ;;  %2760 = vst [vmem:[%s4048_s1 + $0x108] sm:$0xff] %v2696_v56  ;;  %v2632_v10 = vld [vmem:[#allocation2 + $0x90] sm:$0xff]  ;;  %v2707_v12 = vadd.f32 %v4428_v50, %v2631_v9  ;;  %v2709_v14 = vadd.f32 %v4428_v50, %v2633_v11  ;;  %v2635_v16 = vld [vmem:[#allocation2 + $0xb8] sm:$0xff] }
 0x30c   : > { %2761 = vst [vmem:[%s4048_s1 + $0x110] sm:$0xff] %v2697_v57  ;;  %2762 = vst [vmem:[%s4048_s1 + $0x118] sm:$0xff] %v2698_v34  ;;  %v2708_v13 = vadd.f32 %v4432_v51, %v2632_v10  ;;  %v2634_v15 = vld [vmem:[#allocation2 + $0xd0] sm:$0xff]  ;;  %v2636_v17 = vld [vmem:[#allocation2 + $0x88] sm:$0xff]  ;;  %v2711_v19 = vadd.f32 %v4428_v50, %v2635_v16 }
 0x30d   : > { %2763 = vst [vmem:[%s4048_s1 + $0x120] sm:$0xff] %v2699_v35  ;;  %2764 = vst [vmem:[%s4048_s1 + $0x128] sm:$0xff] %v2700_v60  ;;  %v2710_v18 = vadd.f32 %v4432_v51, %v2634_v15  ;;  %v2712_v20 = vadd.f32 %v4432_v51, %v2636_v17  ;;  %v2637_v21 = vld [vmem:[#allocation2 + $0xa8] sm:$0xff]  ;;  %v2639_v23 = vld [vmem:[#allocation2 + $0x170] sm:$0xff] }
 0x30e   : > { %2765 = vst [vmem:[%s4048_s1 + $0x130] sm:$0xff] %v2701_v0  ;;  %2766 = vst [vmem:[%s4048_s1 + $0x138] sm:$0xff] %v2702_v1  ;;  %v2638_v22 = vld [vmem:[#allocation2 + $0x1c8] sm:$0xff]  ;;  %v2713_v24 = vadd.f32 %v4428_v50, %v2637_v21  ;;  %v2715_v44 = vadd.f32 %v4428_v50, %v2639_v23  ;;  %v2640_v26 = vld [vmem:[#allocation2 + $0x178] sm:$0xff] }
 0x30f   : > { %2767 = vst [vmem:[%s4048_s1 + $0x140] sm:$0xff] %v2703_v2  ;;  %2768 = vst [vmem:[%s4048_s1 + $0x148] sm:$0xff] %v2704_v6  ;;  %v2714_v25 = vadd.f32 %v4432_v51, %v2638_v22  ;;  %v2641_v45 = vld [vmem:[#allocation2 + $0x68] sm:$0xff]  ;;  %v2642_v27 = vld [vmem:[#allocation2 + $0x190] sm:$0xff]  ;;  %v2716_v42 = vadd.f32 %v4432_v51, %v2640_v26 }
 0x310   : > { %2769 = vst [vmem:[%s4048_s1 + $0x150] sm:$0xff] %v2705_v7  ;;  %2770 = vst [vmem:[%s4048_s1 + $0x158] sm:$0xff] %v2706_v8  ;;  %v2717_v28 = vadd.f32 %v4428_v50, %v2641_v45  ;;  %v2718_v43 = vadd.f32 %v4432_v51, %v2642_v27  ;;  %v2643_v29 = vld [vmem:[#allocation2 + $0x198] sm:$0xff]  ;;  %v2645_v31 = vld [vmem:[#allocation2 + $0xc0] sm:$0xff] }
 0x311   : > { %2771 = vst [vmem:[%s4048_s1 + $0x160] sm:$0xff] %v2707_v12  ;;  %2772 = vst [vmem:[%s4048_s1 + $0x168] sm:$0xff] %v2708_v13  ;;  %v2644_v30 = vld [vmem:[#allocation2 + $0x38] sm:$0xff]  ;;  %v2719_v32 = vadd.f32 %v4428_v50, %v2643_v29  ;;  %v2721_v36 = vadd.f32 %v4428_v50, %v2645_v31  ;;  %v2646_v38 = vld [vmem:[#allocation2 + $0x1c0] sm:$0xff] }
 0x312   : > { %2773 = vst [vmem:[%s4048_s1 + $0x170] sm:$0xff] %v2709_v14  ;;  %2774 = vst [vmem:[%s4048_s1 + $0x178] sm:$0xff] %v2710_v18  ;;  %v2720_v33 = vadd.f32 %v4432_v51, %v2644_v30  ;;  %v2647_v39 = vld [vmem:[#allocation2 + $0x158] sm:$0xff]  ;;  %v2648_v40 = vld [vmem:[#allocation2 + $0x10] sm:$0xff]  ;;  %v2722_v41 = vadd.f32 %v4432_v51, %v2646_v38 }
 0x313   : > { %2775 = vst [vmem:[%s4048_s1 + $0x180] sm:$0xff] %v2711_v19  ;;  %2776 = vst [vmem:[%s4048_s1 + $0x188] sm:$0xff] %v2712_v20  ;;  %v2723_v46 = vadd.f32 %v4428_v50, %v2647_v39  ;;  %v2724_v47 = vadd.f32 %v4432_v51, %v2648_v40  ;;  %v2649_v48 = vld [vmem:[#allocation2 + $0x58] sm:$0xff]  ;;  %v2650_v49 = vld [vmem:[#allocation2 + $0xa0] sm:$0xff] }
 0x314   : > { %2777 = vst [vmem:[%s4048_s1 + $0x190] sm:$0xff] %v2713_v24  ;;  %2778 = vst [vmem:[%s4048_s1 + $0x198] sm:$0xff] %v2714_v25  ;;  %v2725_v52 = vadd.f32 %v4428_v50, %v2649_v48  ;;  %v2726_v53 = vadd.f32 %v4432_v51, %v2650_v49 }
 0x315   : > { %2779 = vst [vmem:[%s4048_s1 + $0x1a0] sm:$0xff] %v2715_v44  ;;  %2780 = vst [vmem:[%s4048_s1 + $0x1a8] sm:$0xff] %v2716_v42 }
 0x316   : > { %2781 = vst [vmem:[%s4048_s1 + $0x1b0] sm:$0xff] %v2717_v28  ;;  %2782 = vst [vmem:[%s4048_s1 + $0x1b8] sm:$0xff] %v2718_v43 }
 0x317   : > { %2783 = vst [vmem:[%s4048_s1 + $0x1c0] sm:$0xff] %v2719_v32  ;;  %2784 = vst [vmem:[%s4048_s1 + $0x1c8] sm:$0xff] %v2720_v33 }
 0x318   : > { %2785 = vst [vmem:[%s4048_s1 + $0x1d0] sm:$0xff] %v2721_v36  ;;  %2786 = vst [vmem:[%s4048_s1 + $0x1d8] sm:$0xff] %v2722_v41 }
 0x319   : > { %2787 = vst [vmem:[%s4048_s1 + $0x1e0] sm:$0xff] %v2723_v46  ;;  %2788 = vst [vmem:[%s4048_s1 + $0x1e8] sm:$0xff] %v2724_v47 }
 0x31a   : > { %2789 = vst [vmem:[%s4048_s1 + $0x1f0] sm:$0xff] %v2725_v52  ;;  %2790 = vst [vmem:[%s4048_s1 + $0x1f8] sm:$0xff] %v2726_v53 }
 0x31b PF: > { %s4678_s24 = sld [smem:[#allocation19_spill]]  ;;  %s2806_s15 = sshll.u32 %s4048_s1, 4  ;;  %s4569_s15 = int_to_ptr.vmem [resolvable:$true] %s2806_s15 }
 0x31c   : > { %s4679_s12 = sld [smem:[#allocation29_spill]]  ;;  %s2792_s29 = scalar_lea.sflag [#allocation5], %s4021_s6 }
 0x31d   : > { %s3633_s11 = scalar_lea.vmem %s4569_s15, 8192  ;;  %p4680_p0 = scmp.ne.s32.totalorder %s4668_s25, 0 }
 0x31e   : > { %p3634_p1 = scmp.ne.s32.totalorder %s4569_s15, %s3633_s11  ;;  %s3773_s14 = smov [#allocation11]  }
 0x31f   : > { %s3637_s16 = sshll.u32 %s3773_s14, 4  ;;  %s3638_s16 = int_to_ptr.vmem [resolvable:$false] %s3637_s16 }
 0x320   : > { %p3635_p11 = pnand %p3634_p1, %p4680_p0  ;;  %s3639_s13 = scalar_lea.vmem %s3638_s16, 16384 }
 0x321   : > { %s3155_s21 = sshll.u32 %s4678_s24, 13  ;;  %p3640_p9 = scmp.lt.s32.totalorder %s4569_s15, %s3638_s16 }
 0x322   : > { %s4566_s0 = scalar_lea.hbm %s4679_s12, %s3155_s21  ;;  %p3636_p12 = pneg %p3635_p11 }
 0x323   : > { %p3641_p6 = scmp.lt.s32.totalorder %s3639_s13, %s3633_s11 }
 0x325   : > { %p3642_p13 = por %p3641_p6, %p3640_p9 }
 0x327   : > { %p3643_p4 = pnand %p3642_p13, %p3636_p12 }
 0x329   : > { %3646 = shalt.err (!%p3643_p4)
}
 0x32a   : > { %s3647_s9 = scalar_lea.hbm %s4566_s0, 8192  ;;  %s3651_s10 = scalar_lea.hbm %s4679_s12, 16384 }
 0x32b   : > { %p3648_p2 = scmp.ne.s32.totalorder %s4566_s0, %s3647_s9  ;;  %p3652_p7 = scmp.lt.s32.totalorder %s4566_s0, %s4679_s12 }
 0x32c   : > { %p3653_p5 = scmp.lt.s32.totalorder %s3651_s10, %s3647_s9 }
 0x32d   : > { %p3649_p3 = pnand %p3648_p2, %p4680_p0 }
 0x32e   : > { %p3654_p8 = por %p3653_p5, %p3652_p7 }
 0x32f   : > { %p3650_p10 = pneg %p3649_p3 }
 0x331   : > { %p3655_p1 = pnand %p3654_p8, %p3650_p10 }
 0x333   : > { %3658 = shalt.err (!%p3655_p1)
}
 0x334   : > { %s3774_s17 = smov 256   ;;  %s3775_s1 = smov 16  }
 0x335   : > { %3164 = dma.vmem_to_hbm [thread:$0]  (%p4680_p0), %s4569_s15, 8192, %s4566_s0, %s2792_s29, %s3774_s17, %s3774_s17, %s3775_s1  }
 0x336 PF: > { %s4681_s5 = sld [smem:[#allocation17_spill]]  ;;  %p3184_p11 = scmp.ge.s32.totalorder %s3761_s28, 2 }
 0x337   : > { %s4682_s18 = sld [smem:[#allocation25_spill]] }
 0x33c   : > { %s2821_s8 = sand.u32 1, %s4681_s5  }
 0x33d   : > { %p4683_p12 = scmp.ne.s32.totalorder %s4682_s18, 0  ;;  %s2822_s24 = scalar_lea.sflag [#allocation5], %s2821_s8 }
 0x33f   : > { %p3180_p9 = pnand %p3184_p11, %p4683_p12 }
 0x341   : > { %p3181_p6 = pneg %p3180_p9 }
 0x343   : > { %3716 = dma.done.wait (%p3181_p6), %s2822_s24, 8192  }
 0x344   : > { %3718 = vsyncadd (%p3181_p6), %s2822_s24, 4294959104  ;;  %s27_s28 = sadd.s32 1, %s3761_s28   ;;  %s4684_s21 = sld [smem:[#allocation16_spill]] }
 0x345   : > { %p24_p13 = scmp.ge.s32.totalorder %s27_s28, 6   ;;  %s4685_s20 = sld [smem:[#allocation23_spill]] }
 0x346   : > { %s4686_s25 = sld [smem:[#allocation18_spill]]  ;;  %s4691_s18 = smov %s3725_s19 }
 0x347   : > { %s4687_s23 = sld [smem:[#allocation24_spill]]  ;;  %s4695_s24 = smov %s3753_s26 }
 0x348   : > { %s4688_s6 = sld [smem:[#allocation20_spill]] }
 0x349   : > { %s4689_s7 = sld [smem:[#allocation21_spill]] }
 0x34a   : > { %s4690_s27 = sld [smem:[#allocation22_spill]]  ;;  %s4692_s19 = smov %s4684_s21 }
 0x34b   : > { %s4693_s21 = smov %s3737_s22  ;;  %26 = sbr.rel (!%p24_p13) target bundleno = 18 (0x12), region = 130 }
 0x34c   : > { %s4694_s22 = smov %s4686_s25 }
 0x34e   : > { %s4696_s25 = smov %s4688_s6 }
 0x34f   : > { %s4697_s26 = smov %s4689_s7 }
 0x350   :  { %2827 = vsyncpa [#allocation4], 1 }
 0x351   :  { %2829 = vsyncpa [#allocation4 + $0x1], 1 }
 0x352   :  { %2830 = vsyncpa [#allocation7], 1 }
 0x353   :  { %2832 = vsyncpa [#allocation7 + $0x1], 1 }
 0x354   :  { %2833 = vsyncpa [#allocation10], 1 }
 0x355   :  { %2835 = vsyncpa [#allocation10 + $0x1], 1 }
 0x356   :  { %2836 = vsyncpa [#allocation5], 1 }
 0x357   :  { %2838 = vsyncpa [#allocation5 + $0x1], 1 }

</bundles_post_ra>
